<compile_context>
chip_gen: v7x
topology: tpu7x:2x2x1
jax: 0.10.0
libtpu: 0.0.40
codegen_flags: <defaults>
</compile_context>

<pallas_src>
import functools

import jax
import jax.numpy as jnp
from jax.experimental import pallas as pl
from jax.experimental.pallas import tpu as pltpu


def _round_up(v, m):
    return ((v + m - 1) // m) * m


def _pad2d(x, rows, cols):
    r, c = x.shape
    return jnp.pad(x, ((0, rows - r), (0, cols - c)))


def _vmem_limit_bytes():
    # Generation-aware scoped-VMEM cap: ~85% of physical, clamped to 110 MiB
    # (v5e/v6e 128 MiB -> ~109 MiB, v7x 64 MiB -> ~54 MiB).  Conservative
    # fallback (known-good 32 MiB) if the hardware query is unavailable.
    try:
        cap = int(pltpu.get_tpu_info().vmem_capacity_bytes)
        return int(min(cap * 0.85, 110 * 1024 * 1024))
    except Exception:
        return 32 * 1024 * 1024


# ----------------------------- fused Pallas kernel ---------------------------


def _gnn_layers_kernel(x0_ref, a_hbm, wc_ref, bgb_ref, out_ref,
                       a_vmem, a_sem, *, d_pad, d_real, eps):
    """One grid step == one AdaptiveReLUConv (LTSum) + LayerNorm + residual."""
    l = pl.program_id(0)
    cdt = a_vmem.dtype                         # MXU operand dtype (bf16 default)

    # ---- layer-0 prologue: single-buffered copy of A into VMEM, seed state --
    @pl.when(l == 0)
    def _():
        cp = pltpu.make_async_copy(a_hbm, a_vmem, a_sem)
        cp.start()
        out_ref[...] = x0_ref[...]             # encoder output (computed in XLA)
        cp.wait()

    x = out_ref[...]                           # (Np, Dp) f32 resident state
    x_c = x.astype(cdt)                        # cast once, reused by both dots

    # ---- message passing: sum-aggregate incoming-neighbour features ---------
    agg = jnp.dot(a_vmem[...], x_c, preferred_element_type=jnp.float32)

    # ---- LTSum combine as TWO dots against static halves of the stacked
    # weight (no (Np, 2*Dp) concatenate copy) ---------------------------------
    bgb = bgb_ref[...]                         # (3, Dp): bias / gamma / beta
    h = (jnp.dot(x_c, wc_ref[0:d_pad, :], preferred_element_type=jnp.float32)
         + jnp.dot(agg.astype(cdt), wc_ref[d_pad:2 * d_pad, :],
                   preferred_element_type=jnp.float32)
         + bgb[0:1, :])
    h = jnp.maximum(h, 0.0)

    # ---- LayerNorm over the real feature lanes (mask-free, f32) -------------
    # Padded lanes of h are exactly 0, so plain sums only see real lanes;
    # gamma/beta padding is 0, so padded output lanes stay exactly 0.
    inv_d = 1.0 / float(d_real)
    mean = jnp.sum(h, axis=-1, keepdims=True) * inv_d
    msq = jnp.sum(h * h, axis=-1, keepdims=True) * inv_d
    var = msq - mean * mean
    hn = (h - mean) * jax.lax.rsqrt(var + eps) * bgb[1:2, :] + bgb[2:3, :]

    # ---- dropout is identity in eval; residual skip only for layers i > 0 ---
    @pl.when(l == 0)
    def _():
        out_ref[...] = hn

    @pl.when(l > 0)
    def _():
        out_ref[...] = hn + x


# ------------------------------- forward pass --------------------------------


def adaptive_relu_mpnn_forward(params, feats, edge_index, *,
                               compute_dtype=jnp.bfloat16, eps=1e-5):
    """feats: (N, feat_dim) f32, edge_index: (2, E) int32 [src; dst]."""
    n, _ = feats.shape
    d = params["enc_w"].shape[1]
    num_layers = len(params["layers"])

    # One-shot node encoder stays outside the fused kernel (it would otherwise
    # sit resident in VMEM for the whole layer loop); plain XLA handles it.
    x0 = feats @ params["enc_w"] + params["enc_b"]            # (N, D) f32

    # Lane-dense padding (multiples of 128).  NOTE: with tiny embed dims this
    # regime is DMA/VPU-bound; for embed_dim >= 129 on v6e/v7x consider
    # rounding D to 256 for full 256-wide MXU column occupancy.
    n_p = _round_up(n, 128)
    d_p = _round_up(d, 128)

    # Dense adjacency A[dst, src] += 1 (incoming-neighbour sum aggregation).
    # Counts are small integers -> exact in bf16.  Padded rows/cols are zero,
    # so garbage in padded node rows never leaks into real rows.
    # TODO(synk): for real graphs (E << N^2 or N beyond VMEM) replace with a
    # scalar-prefetched CSR / segment-sum aggregation tiled over node rows
    # (which also unlocks a "parallel" axis for the second v7x TensorCore).
    # TODO(synk): on VMEM-capacity-limited v5e/v6e graphs store A as int8;
    # v7x MXU has no int path -- use fp8(e4m3) there.
    src, dst = edge_index[0], edge_index[1]
    a = jnp.zeros((n_p, n_p), jnp.float32).at[dst, src].add(1.0)
    a = a.astype(compute_dtype)

    x0_p = _pad2d(x0, n_p, d_p)                               # padded rows = 0

    # Stacked per-layer weights: merged [W_self ; W_msg] (2*Dp, Dp) and a
    # packed (3, Dp) bias/gamma/beta block (one streamed DMA instead of three).
    wc_l, bgb_l = [], []
    for layer in params["layers"]:
        wc = jnp.zeros((2 * d_p, d_p), jnp.float32)
        wc = wc.at[:d, :d].set(layer["w_self"])
        wc = wc.at[d_p:d_p + d, :d].set(layer["w_msg"])
        wc_l.append(wc.astype(compute_dtype))
        bgb = jnp.zeros((3, d_p), jnp.float32)
        bgb = bgb.at[0, :d].set(layer["b"])
        bgb = bgb.at[1, :d].set(layer["gamma"])
        bgb = bgb.at[2, :d].set(layer["beta"])
        bgb_l.append(bgb)
    wc_s = jnp.stack(wc_l)          # (L, 2*Dp, Dp) streamed per layer
    bgb_s = jnp.stack(bgb_l)        # (L, 3, Dp)    streamed per layer

    kern = functools.partial(_gnn_layers_kernel, d_pad=d_p, d_real=d, eps=eps)

    x_final_p = pl.pallas_call(
        kern,
        out_shape=jax.ShapeDtypeStruct((n_p, d_p), jnp.float32),
        grid_spec=pltpu.PrefetchScalarGridSpec(
            num_scalar_prefetch=0,
            grid=(num_layers,),
            in_specs=[
                # encoder output: fetched once, stays resident
                pl.BlockSpec((n_p, d_p), lambda l: (0, 0)),
                # adjacency stays in HBM; single-buffered manual DMA at l == 0
                pl.BlockSpec(memory_space=pl.ANY),
                # per-layer streamed (double-buffered) weights
                pl.BlockSpec((None, 2 * d_p, d_p), lambda l: (l, 0, 0)),
                pl.BlockSpec((None, 3, d_p), lambda l: (l, 0, 0)),
            ],
            # constant block index across the layer axis -> the output block is
            # VMEM-resident and doubles as the node-feature state x.
            out_specs=pl.BlockSpec((n_p, d_p), lambda l: (0, 0)),
            scratch_shapes=[
                pltpu.VMEM((n_p, n_p), compute_dtype),   # single copy of A
                pltpu.SemaphoreType.DMA,
            ],
        ),
        compiler_params=pltpu.CompilerParams(
            # The layer loop carries state -> sequential.
            # TODO(synk): on v7x, tile the node-row axis and mark it "parallel"
            # (or use core_map + VMEM_SHARED) so the 2nd TensorCore isn't idle.
            dimension_semantics=("arbitrary",),
            vmem_limit_bytes=_vmem_limit_bytes(),
        ),
    )(x0_p, a, wc_s, bgb_s)

    # post_mp node-level head: one-shot matmul, hoisted out of the kernel.
    x_final = x_final_p[:n, :d]
    return x_final @ params["head_w"] + params["head_b"]


# --------------------------- parameter creation ------------------------------


def init_params(key, feat_dim, embed_dim, num_layers, dim_out):
    def dense(k, din, dout):
        kw, kb = jax.random.split(k)
        w = jax.random.normal(kw, (din, dout), jnp.float32) / jnp.sqrt(din)
        b = 0.01 * jax.random.normal(kb, (dout,), jnp.float32)
        return w, b

    keys = jax.random.split(key, num_layers + 2)
    enc_w, enc_b = dense(keys[0], feat_dim, embed_dim)

    layers = []
    for i in range(num_layers):
        k_self, k_msg = jax.random.split(keys[1 + i])
        w_self, b = dense(k_self, embed_dim, embed_dim)
        w_msg, _ = dense(k_msg, embed_dim, embed_dim)
        layers.append(dict(
            w_self=w_self, w_msg=w_msg, b=b,
            gamma=jnp.ones((embed_dim,), jnp.float32),
            beta=jnp.zeros((embed_dim,), jnp.float32),
        ))

    head_w, head_b = dense(keys[-1], embed_dim, dim_out)
    return dict(enc_w=enc_w, enc_b=enc_b, layers=layers,
                head_w=head_w, head_b=head_b)


# ------------------------------ pure-JAX reference ---------------------------


def reference_forward(params, feats, edge_index, eps=1e-5):
    n = feats.shape[0]
    src, dst = edge_index[0], edge_index[1]
    a = jnp.zeros((n, n), jnp.float32).at[dst, src].add(1.0)
    x = feats @ params["enc_w"] + params["enc_b"]
    for i, layer in enumerate(params["layers"]):
        agg = a @ x
        h = jnp.maximum(x @ layer["w_self"] + agg @ layer["w_msg"] + layer["b"], 0.0)
        mean = h.mean(-1, keepdims=True)
        var = ((h - mean) ** 2).mean(-1, keepdims=True)
        hn = (h - mean) / jnp.sqrt(var + eps) * layer["gamma"] + layer["beta"]
        x = hn + x if i > 0 else hn
    return x @ params["head_w"] + params["head_b"]


# ----------------------------------- main -------------------------------------


if __name__ == "__main__":
    key = jax.random.PRNGKey(0)
    k_feat, k_edge, k_param = jax.random.split(key, 3)

    num_nodes = 16      # N
    feat_dim = 8        # raw node feature dim (pre node_encoder)
    embed_dim = 32      # cfg.gnn.dim_inner
    num_layers = 3      # cfg.gnn.layers_mp
    dim_out = 4         # node-level prediction dim
    num_edges = 32

    feats = jax.random.normal(k_feat, (num_nodes, feat_dim), jnp.float32)
    edge_index = jax.random.randint(k_edge, (2, num_edges), 0, num_nodes,
                                    dtype=jnp.int32)
    params = init_params(k_param, feat_dim, embed_dim, num_layers, dim_out)

    ref = reference_forward(params, feats, edge_index)

    # f32 MXU path: strict numerical check against the pure-JAX reference.
    out_f32 = adaptive_relu_mpnn_forward(params, feats, edge_index,
                                         compute_dtype=jnp.float32)
    out_f32 = jax.block_until_ready(out_f32)
    assert out_f32.shape == (num_nodes, dim_out)
    assert jnp.allclose(out_f32, ref, atol=3e-4, rtol=3e-4), \
        "f32 mismatch vs reference"

    # Default bf16 MXU path: drift comes from rounding weights/activations to
    # bf16 (A itself is exact); f32 accumulation + f32 LayerNorm keep it small.
    out_bf16 = adaptive_relu_mpnn_forward(params, feats, edge_index)
    out_bf16 = jax.block_until_ready(out_bf16)
    assert out_bf16.shape == (num_nodes, dim_out)
    assert float(jnp.max(jnp.abs(out_bf16 - ref))) < 0.35, \
        "bf16 drift too large"

    print("KERNEL_OK")
</pallas_src>

<mosaic_0001>
module attributes {stable_mosaic.version = 11 : i64} {
  func.func @_gnn_layers_kernel(%arg0: i32, %arg1: memref<128x128xf32, #tpu.memory_space<vmem>>, %arg2: memref<128x128xf32, #tpu.memory_space<any>>, %arg3: memref<1x256x128xf32, #tpu.memory_space<vmem>>, %arg4: memref<1x3x128xf32, #tpu.memory_space<vmem>>, %arg5: memref<128x128xf32, #tpu.memory_space<vmem>>, %arg6: memref<128x128xf32, #tpu.memory_space<vmem>>, %arg7: memref<!tpu.dma_semaphore, #tpu.memory_space<semaphore_mem>>) attributes {dimension_semantics = [#tpu.dimension_semantics<arbitrary>], iteration_bounds = array<i64: 3>, scalar_prefetch = 0 : i64, scratch_operands = 2 : i64, tpu.core_type = #tpu.core_type<tc>, window_params = [{pipeline_mode = #tpu.pipeline_mode<synchronous>, transform_indices = @transform_0, window_bounds = array<i64: 128, 128>}, {}, {transform_indices = @transform_2, window_bounds = array<i64: 1, 256, 128>}, {transform_indices = @transform_3, window_bounds = array<i64: 1, 3, 128>}, {pipeline_mode = #tpu.pipeline_mode<synchronous>, transform_indices = @transform_4, window_bounds = array<i64: 128, 128>}]} {
    %c0_i32 = arith.constant 0 : i32
    %0 = arith.cmpi eq, %arg0, %c0_i32 : i32
    %1 = arith.extui %0 : i1 to i32
    %c0_i32_0 = arith.constant 0 : i32
    %2 = arith.cmpi ne, %1, %c0_i32_0 : i32
    scf.if %2 {
      tpu.enqueue_dma source(%arg2 : memref<128x128xf32, #tpu.memory_space<any>>) target(%arg6 : memref<128x128xf32, #tpu.memory_space<vmem>>) target_semaphore(%arg7 : memref<!tpu.dma_semaphore, #tpu.memory_space<semaphore_mem>>)
      %c0_24 = arith.constant 0 : index
      %c0_25 = arith.constant 0 : index
      %50 = vector.load %arg1[%c0_24, %c0_25] : memref<128x128xf32, #tpu.memory_space<vmem>>, vector<128x128xf32>
      %c0_26 = arith.constant 0 : index
      %c0_27 = arith.constant 0 : index
      %51 = vector.load %arg5[%c0_26, %c0_27] : memref<128x128xf32, #tpu.memory_space<vmem>>, vector<128x128xf32>
      tpu.vector_store %arg5[%c0_26, %c0_27], %50 {strides = array<i32>} : memref<128x128xf32, #tpu.memory_space<vmem>>, vector<128x128xf32>,
      tpu.wait_dma2 semaphore(%arg7 : memref<!tpu.dma_semaphore, #tpu.memory_space<semaphore_mem>>) src(%arg2 : memref<128x128xf32, #tpu.memory_space<any>>) dst(%arg6 : memref<128x128xf32, #tpu.memory_space<vmem>>)
    } else {
    }
    %c0 = arith.constant 0 : index
    %c0_1 = arith.constant 0 : index
    %3 = vector.load %arg5[%c0, %c0_1] : memref<128x128xf32, #tpu.memory_space<vmem>>, vector<128x128xf32>
    %c0_2 = arith.constant 0 : index
    %c0_3 = arith.constant 0 : index
    %4 = vector.load %arg6[%c0_2, %c0_3] : memref<128x128xf32, #tpu.memory_space<vmem>>, vector<128x128xf32>
    %cst = arith.constant dense<0.000000e+00> : vector<128x128xf32>
    %5 = tpu.matmul %4, %3, %cst {dimension_numbers = #tpu.dot_dimension_numbers<[1], [0], [0], [1], [0, 0, 1, 1], [], []>} : vector<128x128xf32>, vector<128x128xf32>, vector<128x128xf32> -> vector<128x128xf32>
    %c0_4 = arith.constant 0 : index
    %c0_5 = arith.constant 0 : index
    %c0_6 = arith.constant 0 : index
    %6 = vector.load %arg4[%c0_4, %c0_5, %c0_6] : memref<1x3x128xf32, #tpu.memory_space<vmem>>, vector<1x3x128xf32>
    %7 = vector.shape_cast %6 : vector<1x3x128xf32> to vector<3x128xf32>
    %c0_7 = arith.constant 0 : index
    %c0_8 = arith.constant 0 : index
    %c0_9 = arith.constant 0 : index
    %8 = vector.load %arg3[%c0_7, %c0_8, %c0_9] : memref<1x256x128xf32, #tpu.memory_space<vmem>>, vector<1x128x128xf32>
    %9 = vector.shape_cast %8 : vector<1x128x128xf32> to vector<128x128xf32>
    %cst_10 = arith.constant dense<0.000000e+00> : vector<128x128xf32>
    %10 = tpu.matmul %3, %9, %cst_10 {dimension_numbers = #tpu.dot_dimension_numbers<[1], [0], [0], [1], [0, 0, 1, 1], [], []>} : vector<128x128xf32>, vector<128x128xf32>, vector<128x128xf32> -> vector<128x128xf32>
    %c0_11 = arith.constant 0 : index
    %c128 = arith.constant 128 : index
    %c0_12 = arith.constant 0 : index
    %11 = vector.load %arg3[%c0_11, %c128, %c0_12] : memref<1x256x128xf32, #tpu.memory_space<vmem>>, vector<1x128x128xf32>
    %12 = vector.shape_cast %11 : vector<1x128x128xf32> to vector<128x128xf32>
    %cst_13 = arith.constant dense<0.000000e+00> : vector<128x128xf32>
    %13 = tpu.matmul %5, %12, %cst_13 {dimension_numbers = #tpu.dot_dimension_numbers<[1], [0], [0], [1], [0, 0, 1, 1], [], []>} : vector<128x128xf32>, vector<128x128xf32>, vector<128x128xf32> -> vector<128x128xf32>
    %14 = arith.addf %10, %13 : vector<128x128xf32>
    %15 = vector.extract_strided_slice %7 {offsets = [0, 0], sizes = [1, 128], strides = [1, 1]} : vector<3x128xf32> to vector<1x128xf32>
    %16 = vector.broadcast %15 : vector<1x128xf32> to vector<128x128xf32>
    %17 = arith.addf %14, %16 : vector<128x128xf32>
    %cst_14 = arith.constant 0.000000e+00 : f32
    %18 = vector.broadcast %cst_14 : f32 to vector<128x128xf32>
    %19 = arith.maximumf %17, %18 : vector<128x128xf32>
    %cst_15 = arith.constant dense<0.000000e+00> : vector<128xf32>
    %20 = vector.multi_reduction <add>, %19, %cst_15 [1] : vector<128x128xf32> to vector<128xf32>
    %21 = vector.shape_cast %20 : vector<128xf32> to vector<128x1xf32>
    %cst_16 = arith.constant 3.125000e-02 : f32
    %22 = vector.broadcast %cst_16 : f32 to vector<128x1xf32>
    %23 = arith.mulf %21, %22 : vector<128x1xf32>
    %24 = arith.mulf %19, %19 : vector<128x128xf32>
    %cst_17 = arith.constant dense<0.000000e+00> : vector<128xf32>
    %25 = vector.multi_reduction <add>, %24, %cst_17 [1] : vector<128x128xf32> to vector<128xf32>
    %26 = vector.shape_cast %25 : vector<128xf32> to vector<128x1xf32>
    %cst_18 = arith.constant 3.125000e-02 : f32
    %27 = vector.broadcast %cst_18 : f32 to vector<128x1xf32>
    %28 = arith.mulf %26, %27 : vector<128x1xf32>
    %29 = arith.mulf %23, %23 : vector<128x1xf32>
    %30 = arith.subf %28, %29 : vector<128x1xf32>
    %31 = vector.broadcast %23 : vector<128x1xf32> to vector<128x128xf32>
    %32 = arith.subf %19, %31 : vector<128x128xf32>
    %cst_19 = arith.constant 9.99999974E-6 : f32
    %33 = vector.broadcast %cst_19 : f32 to vector<128x1xf32>
    %34 = arith.addf %30, %33 : vector<128x1xf32>
    %35 = math.rsqrt %34 : vector<128x1xf32>
    %36 = vector.broadcast %35 : vector<128x1xf32> to vector<128x128xf32>
    %37 = arith.mulf %32, %36 : vector<128x128xf32>
    %38 = vector.extract_strided_slice %7 {offsets = [1, 0], sizes = [1, 128], strides = [1, 1]} : vector<3x128xf32> to vector<1x128xf32>
    %39 = vector.broadcast %38 : vector<1x128xf32> to vector<128x128xf32>
    %40 = arith.mulf %37, %39 : vector<128x128xf32>
    %41 = vector.extract_strided_slice %7 {offsets = [2, 0], sizes = [1, 128], strides = [1, 1]} : vector<3x128xf32> to vector<1x128xf32>
    %42 = vector.broadcast %41 : vector<1x128xf32> to vector<128x128xf32>
    %43 = arith.addf %40, %42 : vector<128x128xf32>
    %c0_i32_20 = arith.constant 0 : i32
    %44 = arith.cmpi eq, %arg0, %c0_i32_20 : i32
    %45 = arith.extui %44 : i1 to i32
    %c0_i32_21 = arith.constant 0 : i32
    %46 = arith.cmpi ne, %45, %c0_i32_21 : i32
    scf.if %46 {
      %c0_24 = arith.constant 0 : index
      %c0_25 = arith.constant 0 : index
      %50 = vector.load %arg5[%c0_24, %c0_25] : memref<128x128xf32, #tpu.memory_space<vmem>>, vector<128x128xf32>
      tpu.vector_store %arg5[%c0_24, %c0_25], %43 {strides = array<i32>} : memref<128x128xf32, #tpu.memory_space<vmem>>, vector<128x128xf32>,
    } else {
    }
    %c0_i32_22 = arith.constant 0 : i32
    %47 = arith.cmpi sgt, %arg0, %c0_i32_22 : i32
    %48 = arith.extui %47 : i1 to i32
    %c0_i32_23 = arith.constant 0 : i32
    %49 = arith.cmpi ne, %48, %c0_i32_23 : i32
    scf.if %49 {
      %50 = arith.addf %43, %3 : vector<128x128xf32>
      %c0_24 = arith.constant 0 : index
      %c0_25 = arith.constant 0 : index
      %51 = vector.load %arg5[%c0_24, %c0_25] : memref<128x128xf32, #tpu.memory_space<vmem>>, vector<128x128xf32>
      tpu.vector_store %arg5[%c0_24, %c0_25], %50 {strides = array<i32>} : memref<128x128xf32, #tpu.memory_space<vmem>>, vector<128x128xf32>,
    } else {
    }
    return
  }
  func.func @transform_0(%arg0: i32) -> (i32, i32) {
    %c0_i32 = arith.constant 0 : i32
    %c0_i32_0 = arith.constant 0 : i32
    %c0_i32_1 = arith.constant 0 : i32
    return %c0_i32, %c0_i32_0 : i32, i32
  }
  func.func @transform_2(%arg0: i32) -> (i32, i32, i32) {
    %c0_i32 = arith.constant 0 : i32
    %c0_i32_0 = arith.constant 0 : i32
    %c0_i32_1 = arith.constant 0 : i32
    return %arg0, %c0_i32, %c0_i32_0 : i32, i32, i32
  }
  func.func @transform_3(%arg0: i32) -> (i32, i32, i32) {
    %c0_i32 = arith.constant 0 : i32
    %c0_i32_0 = arith.constant 0 : i32
    %c0_i32_1 = arith.constant 0 : i32
    return %arg0, %c0_i32, %c0_i32_0 : i32, i32, i32
  }
  func.func @transform_4(%arg0: i32) -> (i32, i32) {
    %c0_i32 = arith.constant 0 : i32
    %c0_i32_0 = arith.constant 0 : i32
    %c0_i32_1 = arith.constant 0 : i32
    return %c0_i32, %c0_i32_0 : i32, i32
  }
}

</mosaic_0001>

<bundles_post_ra>
// kernel: tpu_custom_call.1
= control target key start
LH: loop header
LB: loop body
LE: loop exit
PB: predicated region body
PF: predicated region fallthrough
CT: control target
= control target key end

     0   :  { %9 = vsyncpa [#allocation5], 0  ;;  %s2573_s0 = inlined_call_operand.hbm [shape: f32[128,128], index: 0, kind: input, shape index: {}]   ;;  %s2574_s1 = inlined_call_operand.hbm [shape: f32[128,128], index: 1, kind: input, shape index: {}]   ;;  %s2575_s2 = inlined_call_operand.hbm [shape: f32[3,256,128], index: 2, kind: input, shape index: {}]   ;;  %s2576_s3 = inlined_call_operand.hbm [shape: f32[3,3,128], index: 3, kind: input, shape index: {}]   ;;  %s2577_s4 = inlined_call_operand.hbm [shape: f32[128,128], index: 4, kind: output, shape index: {}]  }
   0x1   :  { %10 = vsyncpa [#allocation8], 0 }
   0x2   :  { %12 = vsyncpa [#allocation8 + $0x1], 0 }
   0x3   :  { %13 = vsyncpa [#allocation6], 0  ;;  %s1942_s15 = smov 0   ;;  %s1944_s16 = smov 0  }
   0x4   :  { %s1946_s17 = smov 0   ;;  %s1948_s18 = smov 0  }
   0x5 LB: > { %s1963_s19 = sadd.s32 1, %s1906_s18   ;;  %s47_s20 = sadd.s32 1, %s1902_s17  ;;  %s1906_s18 = sphi %s1948_s18, %s2600_s18   ;;  %s1902_s17 = sphi %s1946_s17, %s2599_s17   ;;  %s1898_s16 = sphi %s1944_s16, %s2598_s16   ;;  %s1894_s15 = sphi %s1942_s15, %s2597_s15  }
   0x6   : > { %s44_s21 = ssub.s32 %s1906_s18, %s1963_s19  ;;  %p54_p0 = scmp.ne.s32.totalorder %s1902_s17, %s1898_s16 }
   0x7   : > { %p45_p1 = scmp.eq.s32.totalorder %s44_s21, 0  ;;  %p55_p2 = scmp.eq.s32.totalorder %s1906_s18, 0 }
   0x8   : > { %p1651_p4 = scmp.lt.s32.totalorder %s1906_s18, 3  ;;  %s144_s23 = sand.u32 1, %s1906_s18  }
   0x9   : > { %s1972_s22 = scalar_select %p45_p1, %s1902_s17, %s47_s20  }
   0xa   : > { %p56_p3 = por %p55_p2, %p54_p0  ;;  %s146_s24 = sand.u32 1, %s1902_s17  }
   0xb   : > { %s1217_s25 = sshll.u32 %s146_s24, 8  ;;  %s1234_s26 = sshll.u32 %s1906_s18, 12 }
   0xc   : > { %s1983_s29 = scalar_lea.hbm %s2575_s2, %s1234_s26  ;;  %s148_s30 = scalar_lea.vmem [#allocation7], %s1217_s25 }
   0xd   : > { %s155_s5 = sshll.u32 %s148_s30, 4  ;;  %p1985_p5 = pnand %p1651_p4, %p56_p3  ;;  %s1989_s5 = int_to_ptr.vmem [resolvable:$true] %s155_s5 }
   0xe   : > { %s1991_s7 = scalar_lea.sflag [#allocation8], %s144_s23  ;;  %s1726_s8 = scalar_lea.hbm %s1983_s29, 4096 }
   0xf   : > { %s2584_s6 = scalar_select %p1985_p5, 1, 0 }
  0x10   : > { %p1727_p6 = scmp.ne.s32.totalorder %s1983_s29, %s1726_s8  ;;  %p2579_p7 = pneg %p1985_p5 }
  0x11   : > { %s1731_s11 = scalar_lea.hbm %s2575_s2, 12288  ;;  %p1732_p10 = scmp.lt.u32.totalorder %s1983_s29, %s2575_s2 }
  0x12   : > { %p1729_p8 = pnand %p2579_p7, %p1727_p6  ;;  %p1733_p11 = scmp.lt.u32.totalorder %s1731_s11, %s1726_s8 }
  0x13   : > { %p1735_p13 = scmp.lt.u32.totalorder %s1726_s8, %s1983_s29 }
  0x14   : > { %p1730_p9 = pneg %p1729_p8  ;;  %p1734_p12 = por %p1733_p11, %p1732_p10 }
  0x16   : > { %p1736_p0 = por %p1735_p13, %p1734_p12 }
  0x18   : > { %p1737_p1 = pnand %p1736_p0, %p1730_p9 }
  0x1a   : > { %1740 = shalt.err (!%p1737_p1)
}
  0x1b   : > { %s1741_s14 = scalar_lea.vmem %s1989_s5, 4096  ;;  %s1908_s20 = smov [#allocation7]  }
  0x1c   : > { %p1742_p2 = scmp.ne.s32.totalorder %s1989_s5, %s1741_s14  ;;  %s1746_s21 = sshll.u32 %s1908_s20, 4  ;;  %s1747_s21 = int_to_ptr.vmem [resolvable:$false] %s1746_s21 }
  0x1d   : > { %s1748_s23 = scalar_lea.vmem %s1747_s21, 8192  ;;  %p1749_p6 = scmp.lt.s32.totalorder %s1989_s5, %s1747_s21 }
  0x1e   : > { %p1744_p3 = pnand %p1742_p2, %p2579_p7  ;;  %p1750_p8 = scmp.lt.s32.totalorder %s1748_s23, %s1741_s14 }
  0x20   : > { %p1745_p4 = pneg %p1744_p3  ;;  %p1751_p10 = por %p1750_p8, %p1749_p6 }
  0x22   : > { %p1752_p11 = pnand %p1751_p10, %p1745_p4 }
  0x24   : > { %1755 = shalt.err (!%p1752_p11)
}
  0x25   : > { %s1909_s25 = smov 128   ;;  %s1910_s26 = smov 8  }
  0x26   : > { %1646 = dma.hbm_to_vmem [thread:$0]  (!%p1985_p5), %s1983_s29, 4096, %s1989_s5, %s1991_s7, %s1909_s25, %s1909_s25, %s1910_s26  }
  0x27   : > { %s2023_s27 = sadd.s32 4294967295, %s1906_s18   ;;  %p60_p9 = scmp.ne.s32.totalorder %s1898_s16, %s1894_s15 }
  0x28   : > { %p2578_p12 = scmp.eq.s32.totalorder %s2023_s27, 0  ;;  %p1214_p13 = scmp.ge.s32.totalorder %s1906_s18, 1 }
  0x29   : > { %p118_p0 = scmp.lt.s32.totalorder %s1906_s18, 4  ;;  %s1911_s29 = smov [#allocation4]  }
  0x2a   : > { %p2033_p2 = por %p2578_p12, %p60_p9  ;;  %s130_s5 = sshll.u32 %s1911_s29, 4  ;;  %s131_s5 = int_to_ptr.vmem [resolvable:$true] %s130_s5 }
  0x2b   : > { %p2037_p3 = pnand %p1214_p13, %p118_p0  ;;  %s1220_s8 = sshll.u32 %s146_s24, 2 }
  0x2c   : > { %s2585_s28 = scalar_select %p2033_p2, 1, 0 }
  0x2d   : > { %s2586_s30 = scalar_select %p2037_p3, 1, 0 }
  0x2e   : > { %p1639_p4 = pneg %p2037_p3  ;;  %s1221_s15 = sshll.u32 %s1906_s18, 6 }
  0x2f   : > { %s169_s9 = scalar_lea.vmem [#allocation9], %s1220_s8  ;;  %s2055_s14 = scalar_lea.hbm %s2576_s3, %s1221_s15 }
  0x30   : > { %s176_s10 = sshll.u32 %s169_s9, 4  ;;  %p2048_p6 = pnand %p1639_p4, %p2578_p12  ;;  %s2057_s10 = int_to_ptr.vmem [resolvable:$true] %s176_s10 }
  0x31   : > { %s1756_s18 = scalar_lea.hbm %s2573_s0, 2048 }
  0x32   : > { %p1757_p8 = scmp.ne.s32.totalorder %s2573_s0, %s1756_s18  ;;  %p1758_p10 = pneg %p2048_p6 }
  0x33   : > { %p1763_p13 = scmp.lt.u32.totalorder %s1756_s18, %s2573_s0 }
  0x34   : > { %p1759_p11 = pnand %p1758_p10, %p1757_p8 }
  0x36   : > { %p1760_p9 = pneg %p1759_p11 }
  0x38   : > { %p1765_p0 = pnand %p1763_p13, %p1760_p9 }
  0x3a   : > { %1768 = shalt.err (!%p1765_p0)
}
  0x3b   : > { %s1769_s15 = scalar_lea.vmem %s131_s5, 2048  ;;  %p1777_p7 = scmp.lt.s32.totalorder %s131_s5, %s131_s5 }
  0x3c   : > { %p1770_p4 = scmp.ne.s32.totalorder %s131_s5, %s1769_s15  ;;  %p1778_p2 = scmp.lt.s32.totalorder %s1769_s15, %s1769_s15 }
  0x3e   : > { %p1772_p1 = pnand %p1770_p4, %p1758_p10  ;;  %p1779_p3 = por %p1778_p2, %p1777_p7 }
  0x40   : > { %p1773_p12 = pneg %p1772_p1 }
  0x42   : > { %p1780_p5 = pnand %p1779_p3, %p1773_p12 }
  0x44   : > { %1783 = shalt.err (!%p1780_p5)
}
  0x45   : > { %1642 = dma.hbm_to_vmem [thread:$0]  (!%p2048_p6), %s2573_s0, 2048, %s131_s5, [#allocation5], %s1909_s25, %s1909_s25, %s1910_s26  }
  0x46   : > { %s1784_s13 = scalar_lea.hbm %s2055_s14, 64  ;;  %p2588_p8 = scmp.ne.s32.totalorder %s2584_s6, 0 }
  0x47   : > { %p1785_p1 = scmp.ne.s32.totalorder %s2055_s14, %s1784_s13  ;;  %s1789_s20 = scalar_lea.hbm %s2576_s3, 192 }
  0x48   : > { %p2589_p7 = pneg %p2588_p8  ;;  %p1790_p2 = scmp.lt.u32.totalorder %s2055_s14, %s2576_s3 }
  0x49   : > { %p1791_p3 = scmp.lt.u32.totalorder %s1789_s20, %s1784_s13  ;;  %p1793_p11 = scmp.lt.u32.totalorder %s1784_s13, %s2055_s14 }
  0x4a   : > { %p1787_p12 = pnand %p1785_p1, %p2589_p7 }
  0x4b   : > { %p1792_p10 = por %p1791_p3, %p1790_p2 }
  0x4c   : > { %p1788_p5 = pneg %p1787_p12 }
  0x4d   : > { %p1794_p9 = por %p1793_p11, %p1792_p10 }
  0x4f   : > { %p1795_p13 = pnand %p1794_p9, %p1788_p5 }
  0x51   : > { %1798 = shalt.err (!%p1795_p13)
}
  0x52   : > { %s1799_s25 = scalar_lea.vmem %s2057_s10, 64  ;;  %p2590_p0 = pmov %p2589_p7 }
  0x53   : > { %p1800_p6 = scmp.ne.s32.totalorder %s2057_s10, %s1799_s25  ;;  %s1912_s26 = smov [#allocation9]  }
  0x54   : > { %s1804_s5 = sshll.u32 %s1912_s26, 4  ;;  %s1805_s5 = int_to_ptr.vmem [resolvable:$false] %s1804_s5 }
  0x55   : > { %p1802_p4 = pnand %p1800_p6, %p2590_p0  ;;  %s1806_s23 = scalar_lea.vmem %s1805_s5, 128 }
  0x56   : > { %p1807_p7 = scmp.lt.s32.totalorder %s2057_s10, %s1805_s5  ;;  %p1808_p12 = scmp.lt.s32.totalorder %s1806_s23, %s1799_s25 }
  0x57   : > { %p1803_p1 = pneg %p1802_p4 }
  0x58   : > { %p1809_p2 = por %p1808_p12, %p1807_p7 }
  0x5a   : > { %p1810_p3 = pnand %p1809_p2, %p1803_p1 }
  0x5c   : > { %1813 = shalt.err (!%p1810_p3)
}
  0x5d   : > { %1649 = dma.hbm_to_vmem [thread:$0]  (!%p2588_p8), %s2055_s14, 64, %s2057_s10, %s1991_s7  }
  0x5e   : > { %p2591_p5 = scmp.ne.s32.totalorder %s2586_s30, 0 }
  0x5f   : > { %p2592_p10 = scmp.eq.s32.totalorder (!%p2591_p5), %s2023_s27, 0 }
  0x60   : > { %185 = sbr.rel (%p2591_p5) target bundleno = 866 (0x362), region = 32 }
  0x67   : > { %1879 = dma.done.wait (%p2592_p10), [#allocation5], 2048   ;;  %p2593_p11 = pmov %p2592_p10 }
  0x68   : > { %s191_s29 = sand.u32 1, %s2023_s27   ;;  %s193_s8 = sand.u32 1, %s1898_s16  }
  0x69   : > { %1881 = vsyncadd (%p2593_p11), [#allocation5], 4294965248  ;;  %s1224_s15 = sshll.u32 %s193_s8, 8  ;;  %s192_s6 = scalar_lea.sflag [#allocation8], %s191_s29 }
  0x6a   : > { %s2110_s9 = scalar_lea.vmem [#allocation7], %s1224_s15  ;;  %p2594_p9 = scmp.ne.s32.totalorder %s2585_s28, 0 }
  0x6c   : > { %1883 = dma.done.wait (%p2594_p9), %s192_s6, 4160  }
  0x6d   : > { %1885 = vsyncadd (%p2594_p9), %s192_s6, 4294963136  ;;  %s2116_s7 = sshll.u32 %s193_s8, 2  ;;  %p2595_p8 = scmp.ne.s32.totalorder %s2023_s27, 0 }
  0x6e   : > { %s204_s30 = scalar_lea.vmem [#allocation9], %s2116_s7  ;;  %v242_v0 = vld [vmem:[#allocation4] sm:$0xff] (!%p2595_p8)  ;;  %v243_v1 = vld [vmem:[#allocation4 + $0x8] sm:$0xff] (!%p2595_p8)  ;;  %v244_v2 = vld [vmem:[#allocation4 + $0x10] sm:$0xff] (!%p2595_p8)  ;;  %s1913_s10 = smov (!%p2595_p8), [#allocation2]  }
  0x6f   : > { %230 = sbr.rel (%p2595_p8) target bundleno = 134 (0x86), region = 48  ;;  %s238_s14 = sshll.u32 (!%p2595_p8), %s1913_s10, 4  ;;  %258 = vst [vmem:[#allocation10] sm:$0xff] (!%p2595_p8), %v242_v0  ;;  %259 = vst [vmem:[#allocation10 + $0x8] sm:$0xff] (!%p2595_p8), %v243_v1  ;;  %v245_v3 = vld [vmem:[#allocation4 + $0x18] sm:$0xff] (!%p2595_p8)  ;;  %v246_v4 = vld [vmem:[#allocation4 + $0x20] sm:$0xff] (!%p2595_p8)  ;;  %s239_s14 = int_to_ptr.vmem [resolvable:$true] %s238_s14 }
  0x70   : > { %260 = vst [vmem:[#allocation10 + $0x10] sm:$0xff] (!%p2595_p8), %v244_v2  ;;  %v247_v5 = vld [vmem:[#allocation4 + $0x28] sm:$0xff] (!%p2595_p8)  ;;  %261 = vst [vmem:[#allocation10 + $0x18] sm:$0xff] (!%p2595_p8), %v245_v3  ;;  %v248_v6 = vld [vmem:[#allocation4 + $0x30] sm:$0xff] (!%p2595_p8)  ;;  %s1814_s13 = scalar_lea.hbm (!%p2595_p8), %s2574_s1, 2048 }
  0x71   : > { %262 = vst [vmem:[#allocation10 + $0x20] sm:$0xff] (!%p2595_p8), %v246_v4  ;;  %263 = vst [vmem:[#allocation10 + $0x28] sm:$0xff] (!%p2595_p8), %v247_v5  ;;  %v249_v7 = vld [vmem:[#allocation4 + $0x38] sm:$0xff] (!%p2595_p8)  ;;  %v250_v8 = vld [vmem:[#allocation4 + $0x40] sm:$0xff] (!%p2595_p8)  ;;  %p1815_p13 = scmp.ne.s32.totalorder (!%p2595_p8), %s2574_s1, %s1814_s13  ;;  %p1818_p6 = scmp.lt.u32.totalorder (!%p2595_p8), %s1814_s13, %s2574_s1 }
  0x73   : > { %p1820_p0 = pnand (!%p2595_p8), %p1818_p6, %p1815_p13 }
  0x76   : > { %1823 = shalt.err (!%p1820_p0)  }
  0x77   : > { %s1824_s21 = scalar_lea.vmem %s239_s14, 2048  ;;  %p1829_p1 = scmp.lt.s32.totalorder %s239_s14, %s239_s14 }
  0x78   : > { %p1825_p4 = scmp.ne.s32.totalorder %s239_s14, %s1824_s21  ;;  %p1830_p7 = scmp.lt.s32.totalorder %s1824_s21, %s1824_s21 }
  0x7a   : > { %p1831_p12 = por %p1830_p7, %p1829_p1 }
  0x7c   : > { %p1832_p2 = pnand %p1831_p12, %p1825_p4 }
  0x7e   : > { %1835 = shalt.err (!%p1832_p2)  }
  0x7f   : > { %241 = dma.hbm_to_vmem [thread:$0]  %s2574_s1, 2048, %s239_s14, [#allocation3]  ;;  %264 = vst [vmem:[#allocation10 + $0x30] sm:$0xff] %v248_v6  ;;  %265 = vst [vmem:[#allocation10 + $0x38] sm:$0xff] %v249_v7  ;;  %v251_v9 = vld [vmem:[#allocation4 + $0x48] sm:$0xff]  ;;  %v252_v10 = vld [vmem:[#allocation4 + $0x50] sm:$0xff] }
  0x80   : > { %266 = vst [vmem:[#allocation10 + $0x40] sm:$0xff] %v250_v8  ;;  %v253_v11 = vld [vmem:[#allocation4 + $0x58] sm:$0xff]  ;;  %267 = vst [vmem:[#allocation10 + $0x48] sm:$0xff] %v251_v9  ;;  %v254_v12 = vld [vmem:[#allocation4 + $0x60] sm:$0xff] }
  0x81   : > { %268 = vst [vmem:[#allocation10 + $0x50] sm:$0xff] %v252_v10  ;;  %269 = vst [vmem:[#allocation10 + $0x58] sm:$0xff] %v253_v11  ;;  %v255_v13 = vld [vmem:[#allocation4 + $0x68] sm:$0xff]  ;;  %v256_v14 = vld [vmem:[#allocation4 + $0x70] sm:$0xff] }
  0x82   : > { %270 = vst [vmem:[#allocation10 + $0x60] sm:$0xff] %v254_v12  ;;  %271 = vst [vmem:[#allocation10 + $0x68] sm:$0xff] %v255_v13  ;;  %v257_v15 = vld [vmem:[#allocation4 + $0x78] sm:$0xff] }
  0x83   : > { %272 = vst [vmem:[#allocation10 + $0x70] sm:$0xff] %v256_v14  ;;  %273 = vst [vmem:[#allocation10 + $0x78] sm:$0xff] %v257_v15 }
  0x84   : > { %1886 = dma.done.wait [#allocation3], 2048 }
  0x85   : > { %1887 = vsyncadd [#allocation3], 4294965248 }
  0x86 PF: > { %v2133_v16 = vld [vmem:[#allocation10] sm:$0xff]  ;;  %v2135_v17 = vld [vmem:[#allocation10 + $0x8] sm:$0xff]  ;;  %v293_v25 = vld [vmem:[#allocation2] sm:$0xff]  ;;  %p2596_p3 = scmp.ne.s32.totalorder %s2023_s27, 0 }
  0x87   : > { %v2137_v18 = vld [vmem:[#allocation10 + $0x10] sm:$0xff]  ;;  %v1499_v19 = vpack.c.bf16 %v2135_v17, %v2133_v16  ;;  %v2141_v20 = vld [vmem:[#allocation10 + $0x18] sm:$0xff]  ;;  %1363 = vmatprep.mubr.f32.mxu0 %v293_v25  ;;  %v2157_v29 = vld [vmem:[#allocation10 + $0x40] sm:$0xff] }
  0x88   : > { %v1503_v21 = vpack.c.bf16 %v2141_v20, %v2137_v18  ;;  %v2145_v22 = vld [vmem:[#allocation10 + $0x20] sm:$0xff]  ;;  %v2147_v23 = vld [vmem:[#allocation10 + $0x28] sm:$0xff]  ;;  %v2151_v26 = vld [vmem:[#allocation10 + $0x30] sm:$0xff] }
  0x89   : > { %1500 = vmatprep.subr.bf16.mxu0 %v1499_v19  ;;  %v1507_v24 = vpack.c.bf16 %v2147_v23, %v2145_v22  ;;  %v2153_v27 = vld [vmem:[#allocation10 + $0x38] sm:$0xff]  ;;  %v2159_v30 = vld [vmem:[#allocation10 + $0x48] sm:$0xff]  ;;  %v472_v32 = vld [vmem:[%s2110_s9 + $0x88] sm:$0xff] }
  0x8a   : > { %1502 = vmatpush3.bf16.msra.mxu0 %v1499_v19  ;;  %v1511_v28 = vpack.c.bf16 %v2153_v27, %v2151_v26  ;;  %v471_v31 = vld [vmem:[%s2110_s9 + $0x80] sm:$0xff]  ;;  %v473_v34 = vld [vmem:[%s2110_s9 + $0x90] sm:$0xff]  ;;  %v1515_v35 = vpack.c.bf16 %v2159_v30, %v2157_v29  ;;  %v2166_v36 = vld [vmem:[#allocation10 + $0x50] sm:$0xff] }
  0x8b   : > { %1504 = vmatprep.subr.bf16.mxu0 %v1503_v21  ;;  %v1531_v33 = vpack.c.bf16 %v472_v32, %v471_v31  ;;  %v474_v37 = vld [vmem:[%s2110_s9 + $0x98] sm:$0xff]  ;;  %v2169_v38 = vld [vmem:[#allocation10 + $0x58] sm:$0xff]  ;;  %v476_v41 = vld [vmem:[%s2110_s9 + $0xa8] sm:$0xff] }
  0x8c   : > { %v1535_v39 = vpack.c.bf16 %v474_v37, %v473_v34  ;;  %v475_v40 = vld [vmem:[%s2110_s9 + $0xa0] sm:$0xff]  ;;  %v1519_v43 = vpack.c.bf16 %v2169_v38, %v2166_v36  ;;  %v477_v44 = vld [vmem:[%s2110_s9 + $0xb0] sm:$0xff]  ;;  %v478_v45 = vld [vmem:[%s2110_s9 + $0xb8] sm:$0xff] }
  0x8d   : > { %1532 = vmatprep.subr.bf16.mxu1 %v1531_v33  ;;  %v1539_v42 = vpack.c.bf16 %v476_v41, %v475_v40  ;;  %v2177_v46 = vld [vmem:[#allocation10 + $0x60] sm:$0xff]  ;;  %v2179_v47 = vld [vmem:[#allocation10 + $0x68] sm:$0xff]  ;;  %v1543_v48 = vpack.c.bf16 %v478_v45, %v477_v44  ;;  %v479_v50 = vld [vmem:[%s2110_s9 + $0xc0] sm:$0xff] }
  0x8e   : > { %1506 = vmatpush3.bf16.msra.mxu0 %v1503_v21  ;;  %1534 = vmatpush3.bf16.msra.mxu1 %v1531_v33  ;;  %v1523_v49 = vpack.c.bf16 %v2179_v47, %v2177_v46  ;;  %v480_v51 = vld [vmem:[%s2110_s9 + $0xc8] sm:$0xff]  ;;  %v2185_v52 = vld [vmem:[#allocation10 + $0x70] sm:$0xff]  ;;  %v2187_v53 = vld [vmem:[#allocation10 + $0x78] sm:$0xff] }
  0x8f   : > { %1508 = vmatprep.subr.bf16.mxu0 %v1507_v24  ;;  %1536 = vmatprep.subr.bf16.mxu1 %v1535_v39  ;;  %v1547_v54 = vpack.c.bf16 %v480_v51, %v479_v50  ;;  %v1527_v55 = vpack.c.bf16 %v2187_v53, %v2185_v52  ;;  %v481_v56 = vld [vmem:[%s2110_s9 + $0xd0] sm:$0xff]  ;;  %v482_v57 = vld [vmem:[%s2110_s9 + $0xd8] sm:$0xff]  ;;  %v455_v58 = vld [vmem:[%s2110_s9] sm:$0xff] }
  0x90   : > { %v456_v59 = vld [vmem:[%s2110_s9 + $0x8] sm:$0xff]  ;;  %v1551_v60 = vpack.c.bf16 %v482_v57, %v481_v56  ;;  %v457_v62 = vld [vmem:[%s2110_s9 + $0x10] sm:$0xff]  ;;  %v458_v63 = vld [vmem:[%s2110_s9 + $0x18] sm:$0xff] }
  0x91   : > { %v2195_v61 = vpack.c.bf16 %v456_v59, %v455_v58  ;;  %v483_v0 = vld [vmem:[%s2110_s9 + $0xe0] sm:$0xff]  ;;  %v484_v1 = vld [vmem:[%s2110_s9 + $0xe8] sm:$0xff]  ;;  %v295_v3 = vld [vmem:[#allocation2 + $0x10] sm:$0xff]  ;;  %v2202_v4 = vpack.c.bf16 %v458_v63, %v457_v62 }
  0x92   : > { %1510 = vmatpush3.bf16.msra.mxu0 %v1507_v24  ;;  %1538 = vmatpush3.bf16.msra.mxu1 %v1535_v39  ;;  %v294_v2 = vld [vmem:[#allocation2 + $0x8] sm:$0xff]  ;;  %v459_v5 = vld [vmem:[%s2110_s9 + $0x20] sm:$0xff]  ;;  %v1555_v6 = vpack.c.bf16 %v484_v1, %v483_v0  ;;  %v485_v8 = vld [vmem:[%s2110_s9 + $0xf0] sm:$0xff] }
  0x93   : > { %1512 = vmatprep.subr.bf16.mxu0 %v1511_v28  ;;  %1540 = vmatprep.subr.bf16.mxu1 %v1539_v42  ;;  %v460_v7 = vld [vmem:[%s2110_s9 + $0x28] sm:$0xff]  ;;  %v486_v9 = vld [vmem:[%s2110_s9 + $0xf8] sm:$0xff]  ;;  %v297_v11 = vld [vmem:[#allocation2 + $0x20] sm:$0xff] }
  0x94   : > { %v296_v10 = vld [vmem:[#allocation2 + $0x18] sm:$0xff]  ;;  %v2210_v12 = vpack.c.bf16 %v460_v7, %v459_v5  ;;  %v1559_v13 = vpack.c.bf16 %v486_v9, %v485_v8  ;;  %v461_v14 = vld [vmem:[%s2110_s9 + $0x30] sm:$0xff]  ;;  %v298_v19 = vld [vmem:[#allocation2 + $0x28] sm:$0xff] }
  0x95   : > { %v462_v15 = vld [vmem:[%s2110_s9 + $0x38] sm:$0xff]  ;;  %v299_v21 = vld [vmem:[#allocation2 + $0x30] sm:$0xff]  ;;  %v463_v25 = vld [vmem:[%s2110_s9 + $0x40] sm:$0xff] }
  0x96   : > { %1514 = vmatpush3.bf16.msra.mxu0 %v1511_v28  ;;  %1542 = vmatpush3.bf16.msra.mxu1 %v1539_v42  ;;  %v2216_v24 = vpack.c.bf16 %v462_v15, %v461_v14  ;;  %v464_v28 = vld [vmem:[%s2110_s9 + $0x48] sm:$0xff]  ;;  %v300_v31 = vld [vmem:[#allocation2 + $0x38] sm:$0xff]  ;;  %v301_v32 = vld [vmem:[#allocation2 + $0x40] sm:$0xff] }
  0x97   : > { %1516 = vmatprep.subr.bf16.mxu0 %v1515_v35  ;;  %1544 = vmatprep.subr.bf16.mxu1 %v1543_v48  ;;  %v2222_v33 = vpack.c.bf16 %v464_v28, %v463_v25  ;;  %v465_v34 = vld [vmem:[%s2110_s9 + $0x50] sm:$0xff]  ;;  %v302_v37 = vld [vmem:[#allocation2 + $0x48] sm:$0xff]  ;;  %v467_v41 = vld [vmem:[%s2110_s9 + $0x60] sm:$0xff] }
  0x98   : > { %v303_v39 = vld [vmem:[#allocation2 + $0x50] sm:$0xff]  ;;  %v468_v42 = vld [vmem:[%s2110_s9 + $0x68] sm:$0xff]  ;;  %v305_v44 = vld [vmem:[#allocation2 + $0x60] sm:$0xff] }
  0x99   : > { %v2235_v45 = vpack.c.bf16 %v468_v42, %v467_v41  ;;  %v306_v50 = vld [vmem:[#allocation2 + $0x68] sm:$0xff]  ;;  %v307_v51 = vld [vmem:[#allocation2 + $0x70] sm:$0xff]  ;;  %v2276_v25 = vld [vmem:[%s204_s30] sm:$0x7] }
  0x9a   : > { %1518 = vmatpush3.bf16.msra.mxu0 %v1515_v35  ;;  %1546 = vmatpush3.bf16.msra.mxu1 %v1543_v48  ;;  %v466_v35 = vld [vmem:[%s2110_s9 + $0x58] sm:$0xff]  ;;  %v469_v48 = vld [vmem:[%s2110_s9 + $0x70] sm:$0xff] }
  0x9b   : > { %1520 = vmatprep.subr.bf16.mxu0 %v1519_v43  ;;  %1548 = vmatprep.subr.bf16.mxu1 %v1547_v54  ;;  %v2229_v40 = vpack.c.bf16 %v466_v35, %v465_v34 }
  0x9e   : > { %1522 = vmatpush3.bf16.msra.mxu0 %v1519_v43  ;;  %1550 = vmatpush3.bf16.msra.mxu1 %v1547_v54  ;;  %v304_v43 = vld [vmem:[#allocation2 + $0x58] sm:$0xff] }
  0x9f   : > { %1524 = vmatprep.subr.bf16.mxu0 %v1523_v49  ;;  %1552 = vmatprep.subr.bf16.mxu1 %v1551_v60 }
  0xa2   : > { %1526 = vmatpush3.bf16.msra.mxu0 %v1523_v49  ;;  %1554 = vmatpush3.bf16.msra.mxu1 %v1551_v60  ;;  %v470_v49 = vld [vmem:[%s2110_s9 + $0x78] sm:$0xff] }
  0xa3   : > { %1528 = vmatprep.subr.bf16.mxu0 %v1527_v55  ;;  %1556 = vmatprep.subr.bf16.mxu1 %v1555_v6  ;;  %v1591_v54 = vpack.c.bf16 %v470_v49, %v469_v48 }
  0xa6   : > { %1530 = vmatpush3.bf16.msra.mxu0 %v1527_v55  ;;  %1558 = vmatpush3.bf16.msra.mxu1 %v1555_v6  ;;  %v308_v55 = vld [vmem:[#allocation2 + $0x78] sm:$0xff] }
  0xa7   : > { %1564 = vmatprep.subr.bf16.mxu0 %v2195_v61  ;;  %1560 = vmatprep.subr.bf16.mxu1 %v1559_v13 }
  0xa9   : > { %1364 = vmatmul.mubr.f32.vlgmr.msra.gmra.mrb[0].mxu0 %v294_v2 }
  0xaa   : > { %1366 = vmatprep.mubr.f32.mxu0 %v295_v3  ;;  %1566 = vmatpush3.bf16.msra.mxu0 %v2195_v61 }
  0xab   : > { %1568 = vmatprep.subr.bf16.mxu0 %v2202_v4  ;;  %1562 = vmatpush3.bf16.msra.mxu1 %v1559_v13 }
  0xac   : > { %1595 = vmatprep.subr.bf16.mxu1 %v2195_v61 }
  0xad   : > { %1367 = vmatmul.mubr.f32.gmra.mrb[2].mxu0 %v296_v10 }
  0xae   : > { %1369 = vmatprep.mubr.f32.mxu0 %v297_v11  ;;  %1570 = vmatpush3.bf16.msra.mxu0 %v2202_v4 }
  0xaf   : > { %1572 = vmatprep.subr.bf16.mxu0 %v2210_v12 }
  0xb1   : > { %1370 = vmatmul.mubr.f32.gmra.mrb[4].mxu0 %v298_v19  ;;  %v777_v19 = vlaneseq }
  0xb2   : > { %1372 = vmatprep.mubr.f32.mxu0 %v299_v21  ;;  %1574 = vmatpush3.bf16.msra.mxu0 %v2210_v12 }
  0xb3   : > { %1576 = vmatprep.subr.bf16.mxu0 %v2216_v24  ;;  %v2271_v21 = vshrl.u32 %v777_v19, 7 }
  0xb5   : > { %1373 = vmatmul.mubr.f32.gmra.mrb[6].mxu0 %v300_v31 }
  0xb6   : > { %1375 = vmatprep.mubr.f32.mxu0 %v301_v32  ;;  %1578 = vmatpush3.bf16.msra.mxu0 %v2216_v24 }
  0xb7   : > { %1580 = vmatprep.subr.bf16.mxu0 %v2222_v33 }
  0xb9   : > { %1376 = vmatmul.mubr.f32.gmra.mrb[8].mxu0 %v302_v37 }
  0xba   : > { %1378 = vmatprep.mubr.f32.mxu0 %v303_v39  ;;  %1582 = vmatpush3.bf16.msra.mxu0 %v2222_v33 }
  0xbb   : > { %1584 = vmatprep.subr.bf16.mxu0 %v2229_v40 }
  0xbd   : > { %1379 = vmatmul.mubr.f32.gmra.mrb[10].mxu0 %v304_v43 }
  0xbe   : > { %1381 = vmatprep.mubr.f32.mxu0 %v305_v44  ;;  %1586 = vmatpush3.bf16.msra.mxu0 %v2229_v40 }
  0xbf   : > { %1588 = vmatprep.subr.bf16.mxu0 %v2235_v45 }
  0xc1   : > { %1382 = vmatmul.mubr.f32.gmra.mrb[12].mxu0 %v306_v50 }
  0xc2   : > { %1384 = vmatprep.mubr.f32.mxu0 %v307_v51  ;;  %1590 = vmatpush3.bf16.msra.mxu0 %v2235_v45 }
  0xc3   : > { %1592 = vmatprep.subr.bf16.mxu0 %v1591_v54 }
  0xc5   : > { %1385 = vmatmul.mubr.f32.gmra.mrb[14].mxu0 %v308_v55 }
  0xc6   : > { %1594 = vmatpush3.bf16.msra.mxu0 %v1591_v54  ;;  %1475 = vmatprep.mubr.f32.mxu0 %v2133_v16 }
  0xc9   : > { %1476 = vmatmul.mubr.f32.vlgmr.msra.gmra.mrb[16].mxu0 %v2135_v17 }
  0xca   : > { %1478 = vmatprep.mubr.f32.mxu0 %v2137_v18 }
  0xcd   : > { %1479 = vmatmul.mubr.f32.gmra.mrb[18].mxu0 %v2141_v20 }
  0xce   : > { %1481 = vmatprep.mubr.f32.mxu0 %v2145_v22 }
  0xd1   : > { %1482 = vmatmul.mubr.f32.gmra.mrb[20].mxu0 %v2147_v23 }
  0xd2   : > { %1484 = vmatprep.mubr.f32.mxu0 %v2151_v26 }
  0xd5   : > { %1485 = vmatmul.mubr.f32.gmra.mrb[22].mxu0 %v2153_v27 }
 0x17c   : > { %v1365_v56 = vpop.f32.mrb[0].mxu0 }
 0x17d   : > { %v375_v57 = vpop.f32.mrb[1].mxu0 }
 0x17e   : > { %1419 = vmatprep.mubr.f32.mxu1 %v375_v57 }
 0x17f   : > { %1420 = vmatmul.mubr.f32.vlgmr.msra.gmra.mrb[0].mxu1 %v1365_v56 }
 0x180   : > { %v1368_v58 = vpop.f32.mrb[2].mxu0  ;;  %1603 = vmatpush3.bf16.msra.mxu1 %v2195_v61 }
 0x181   : > { %v385_v59 = vpop.f32.mrb[3].mxu0  ;;  %1596 = vmatprep.subr.bf16.mxu1 %v2202_v4 }
 0x182   : > { %1422 = vmatprep.mubr.f32.mxu1 %v385_v59 }
 0x183   : > { %1423 = vmatmul.mubr.f32.gmra.mrb[2].mxu1 %v1368_v58 }
 0x184   : > { %v1371_v60 = vpop.f32.mrb[4].mxu0  ;;  %1604 = vmatpush3.bf16.msra.mxu1 %v2202_v4 }
 0x185   : > { %v395_v62 = vpop.f32.mrb[5].mxu0  ;;  %1597 = vmatprep.subr.bf16.mxu1 %v2210_v12 }
 0x186   : > { %1425 = vmatprep.mubr.f32.mxu1 %v395_v62 }
 0x187   : > { %1426 = vmatmul.mubr.f32.gmra.mrb[4].mxu1 %v1371_v60 }
 0x188   : > { %v1374_v63 = vpop.f32.mrb[6].mxu0  ;;  %1605 = vmatpush3.bf16.msra.mxu1 %v2210_v12 }
 0x189   : > { %v405_v0 = vpop.f32.mrb[7].mxu0  ;;  %1598 = vmatprep.subr.bf16.mxu1 %v2216_v24 }
 0x18a   : > { %1428 = vmatprep.mubr.f32.mxu1 %v405_v0 }
 0x18b   : > { %1429 = vmatmul.mubr.f32.gmra.mrb[6].mxu1 %v1374_v63 }
 0x18c   : > { %v1377_v61 = vpop.f32.mrb[8].mxu0  ;;  %1606 = vmatpush3.bf16.msra.mxu1 %v2216_v24  ;;  %v779_v24 = vsub.s32 0, %v2271_v21 }
 0x18d   : > { %v415_v1 = vpop.f32.mrb[9].mxu0  ;;  %1599 = vmatprep.subr.bf16.mxu1 %v2222_v33 }
 0x18e   : > { %1431 = vmatprep.mubr.f32.mxu1 %v415_v1  ;;  %v2279_v28 = vrot.slane %v2276_v25, %v779_v24 }
 0x18f   : > { %1432 = vmatmul.mubr.f32.gmra.mrb[8].mxu1 %v1377_v61 }
 0x190   : > { %v1380_v2 = vpop.f32.mrb[10].mxu0  ;;  %1607 = vmatpush3.bf16.msra.mxu1 %v2222_v33 }
 0x191   : > { %v425_v3 = vpop.f32.mrb[11].mxu0  ;;  %1600 = vmatprep.subr.bf16.mxu1 %v2229_v40 }
 0x192   : > { %1434 = vmatprep.mubr.f32.mxu1 %v425_v3 }
 0x193   : > { %1435 = vmatmul.mubr.f32.gmra.mrb[10].mxu1 %v1380_v2 }
 0x194   : > { %v1383_v4 = vpop.f32.mrb[12].mxu0  ;;  %1608 = vmatpush3.bf16.msra.mxu1 %v2229_v40 }
 0x195   : > { %v435_v5 = vpop.f32.mrb[13].mxu0  ;;  %1601 = vmatprep.subr.bf16.mxu1 %v2235_v45 }
 0x196   : > { %1437 = vmatprep.mubr.f32.mxu1 %v435_v5 }
 0x197   : > { %1438 = vmatmul.mubr.f32.gmra.mrb[12].mxu1 %v1383_v4 }
 0x198   : > { %v1386_v6 = vpop.f32.mrb[14].mxu0  ;;  %1609 = vmatpush3.bf16.msra.mxu1 %v2235_v45 }
 0x199   : > { %v445_v7 = vpop.f32.mrb[15].mxu0  ;;  %1602 = vmatprep.subr.bf16.mxu1 %v1591_v54 }
 0x19a   : > { %1440 = vmatprep.mubr.f32.mxu1 %v445_v7 }
 0x19b   : > { %1441 = vmatmul.mubr.f32.gmra.mrb[14].mxu1 %v1386_v6 }
 0x19c   : > { %1610 = vmatpush3.bf16.msra.mxu1 %v1591_v54  ;;  %1487 = vmatprep.mubr.f32.mxu1 %v2157_v29  ;;  %v1477_v8 = vpop.f32.mrb[16].mxu0 }
 0x19d   : > { %v698_v9 = vpop.f32.mrb[17].mxu0 }
 0x19f   : > { %1488 = vmatmul.mubr.f32.vlgmr.msra.gmra.mrb[8].mxu1 %v2159_v30 }
 0x1a0   : > { %1490 = vmatprep.mubr.f32.mxu1 %v2166_v36  ;;  %v1480_v10 = vpop.f32.mrb[18].mxu0 }
 0x1a1   : > { %v708_v11 = vpop.f32.mrb[19].mxu0 }
 0x1a3   : > { %1491 = vmatmul.mubr.f32.gmra.mrb[10].mxu1 %v2169_v38 }
 0x1a4   : > { %1493 = vmatprep.mubr.f32.mxu1 %v2177_v46  ;;  %v1483_v12 = vpop.f32.mrb[20].mxu0 }
 0x1a5   : > { %v718_v13 = vpop.f32.mrb[21].mxu0 }
 0x1a7   : > { %1494 = vmatmul.mubr.f32.gmra.mrb[12].mxu1 %v2179_v47 }
 0x1a8   : > { %1496 = vmatprep.mubr.f32.mxu1 %v2185_v52  ;;  %v1486_v14 = vpop.f32.mrb[22].mxu0 }
 0x1a9   : > { %v728_v15 = vpop.f32.mrb[23].mxu0 }
 0x1ab   : > { %1497 = vmatmul.mubr.f32.gmra.mrb[14].mxu1 %v2187_v53 }
 0x252   : > { %v1421_v31 = vpop.f32.mrb[0].mxu1 }
 0x253   : > { %v704_v32 = vadd.f32 %v1477_v8, %v1421_v31  ;;  %v553_v33 = vpop.f32.mrb[1].mxu1 }
 0x254   : > { %v699_v34 = vadd.f32 %v698_v9, %v553_v33 }
 0x255   : > { %v782_v35 = vadd.f32 %v2279_v28, %v704_v32 }
 0x256   : > { %v1424_v37 = vpop.f32.mrb[2].mxu1  ;;  %v781_v40 = vadd.f32 %v2279_v28, %v699_v34 }
 0x257   : > { %v2282_v39 = vmax.f32 %v782_v35, 0.0  ;;  %v714_v41 = vadd.f32 %v1480_v10, %v1424_v37  ;;  %v563_v42 = vpop.f32.mrb[3].mxu1 }
 0x258   : > { %v709_v43 = vadd.f32 %v708_v11, %v563_v42  ;;  %v2289_v49 = vmax.f32 %v781_v40, 0.0 }
 0x259   : > { %v784_v44 = vadd.f32 %v2279_v28, %v714_v41  ;;  %815 = vadd.xlane.f32.xlu0 %v2282_v39  ;;  %v862_v45 = vmul.f32 %v2282_v39, %v2282_v39 }
 0x25a   : > { %v1427_v48 = vpop.f32.mrb[4].mxu1  ;;  %v783_v50 = vadd.f32 %v2279_v28, %v709_v43  ;;  %v861_v62 = vmul.f32 %v2289_v49, %v2289_v49 }
 0x25b   : > { %v724_v51 = vadd.f32 %v1483_v12, %v1427_v48  ;;  %v573_v54 = vpop.f32.mrb[5].mxu1  ;;  %879 = vadd.xlane.f32.xlu1 %v862_v45  ;;  %v2292_v56 = vmax.f32 %v784_v44, 0.0 }
 0x25c   : > { %v719_v55 = vadd.f32 %v718_v13, %v573_v54  ;;  %v2295_v58 = vmax.f32 %v783_v50, 0.0 }
 0x25d   : > { %813 = vadd.xlane.f32.xlu0 %v2289_v49  ;;  %v786_v1 = vadd.f32 %v2279_v28, %v724_v51  ;;  %v864_v2 = vmul.f32 %v2292_v56, %v2292_v56 }
 0x25e   : > { %v1430_v57 = vpop.f32.mrb[6].mxu1  ;;  %v785_v0 = vadd.f32 %v2279_v28, %v719_v55  ;;  %v863_v61 = vmul.f32 %v2295_v58, %v2295_v58 }
 0x25f   : > { %v734_v59 = vadd.f32 %v1486_v14, %v1430_v57  ;;  %v583_v60 = vpop.f32.mrb[7].mxu1  ;;  %819 = vadd.xlane.f32.xlu1 %v2292_v56  ;;  %v2309_v4 = vmax.f32 %v786_v1, 0.0 }
 0x260   : > { %v729_v63 = vadd.f32 %v728_v15, %v583_v60  ;;  %v2307_v3 = vmax.f32 %v785_v0, 0.0 }
 0x261   : > { %877 = vadd.xlane.f32.xlu0 %v861_v62  ;;  %v788_v7 = vadd.f32 %v2279_v28, %v734_v59  ;;  %v866_v8 = vmul.f32 %v2309_v4, %v2309_v4 }
 0x262   : > { %v787_v5 = vadd.f32 %v2279_v28, %v729_v63  ;;  %v865_v6 = vmul.f32 %v2307_v3, %v2307_v3 }
 0x263   : > { %817 = vadd.xlane.f32.xlu1 %v2295_v58  ;;  %v2321_v10 = vmax.f32 %v788_v7, 0.0 }
 0x264   : > { %v2319_v9 = vmax.f32 %v787_v5, 0.0 }
 0x265   : > { %881 = vadd.xlane.f32.xlu0 %v863_v61  ;;  %v868_v19 = vmul.f32 %v2321_v10, %v2321_v10 }
 0x266   : > { %v867_v13 = vmul.f32 %v2319_v9, %v2319_v9 }
 0x267   : > { %883 = vadd.xlane.f32.xlu1 %v864_v2 }
 0x269   : > { %821 = vadd.xlane.f32.xlu0 %v2307_v3 }
 0x26b   : > { %823 = vadd.xlane.f32.xlu1 %v2309_v4 }
 0x26d   : > { %885 = vadd.xlane.f32.xlu0 %v865_v6 }
 0x26f   : > { %887 = vadd.xlane.f32.xlu1 %v866_v8 }
 0x271   : > { %825 = vadd.xlane.f32.xlu0 %v2319_v9 }
 0x272   : > { %v1489_v11 = vpop.f32.mrb[8].mxu1 }
 0x273   : > { %827 = vadd.xlane.f32.xlu1 %v2321_v10  ;;  %v738_v12 = vpop.f32.mrb[9].mxu1  ;;  %v790_v15 = vadd.f32 %v1489_v11, %v2279_v28 }
 0x274   : > { %v789_v14 = vadd.f32 %v2279_v28, %v738_v12 }
 0x275   : > { %889 = vadd.xlane.f32.xlu0 %v867_v13  ;;  %v2333_v33 = vmax.f32 %v790_v15, 0.0 }
 0x276   : > { %v2331_v24 = vmax.f32 %v789_v14, 0.0  ;;  %v1492_v31 = vpop.f32.mrb[10].mxu1 }
 0x277   : > { %891 = vadd.xlane.f32.xlu1 %v868_v19  ;;  %v748_v32 = vpop.f32.mrb[11].mxu1  ;;  %v792_v41 = vadd.f32 %v1492_v31, %v2279_v28  ;;  %v870_v42 = vmul.f32 %v2333_v33, %v2333_v33 }
 0x278   : > { %v791_v35 = vadd.f32 %v2279_v28, %v748_v32  ;;  %v869_v40 = vmul.f32 %v2331_v24, %v2331_v24 }
 0x279   : > { %829 = vadd.xlane.f32.xlu0 %v2331_v24  ;;  %v2345_v48 = vmax.f32 %v792_v41, 0.0 }
 0x27a   : > { %v1495_v34 = vpop.f32.mrb[12].mxu1  ;;  %v2343_v44 = vmax.f32 %v791_v35, 0.0 }
 0x27b   : > { %831 = vadd.xlane.f32.xlu1 %v2333_v33  ;;  %v758_v37 = vpop.f32.mrb[13].mxu1  ;;  %v794_v54 = vadd.f32 %v1495_v34, %v2279_v28  ;;  %v872_v55 = vmul.f32 %v2345_v48, %v2345_v48 }
 0x27c   : > { %v793_v50 = vadd.f32 %v2279_v28, %v758_v37  ;;  %v871_v51 = vmul.f32 %v2343_v44, %v2343_v44 }
 0x27d   : > { %893 = vadd.xlane.f32.xlu0 %v869_v40  ;;  %v2357_v59 = vmax.f32 %v794_v54, 0.0 }
 0x27e   : > { %v1498_v43 = vpop.f32.mrb[14].mxu1  ;;  %v2355_v57 = vmax.f32 %v793_v50, 0.0 }
 0x27f   : > { %895 = vadd.xlane.f32.xlu1 %v870_v42  ;;  %v768_v45 = vpop.f32.mrb[15].mxu1  ;;  %v796_v63 = vadd.f32 %v1498_v43, %v2279_v28  ;;  %v874_v0 = vmul.f32 %v2357_v59, %v2357_v59 }
 0x280   : > { %v795_v60 = vadd.f32 %v2279_v28, %v768_v45  ;;  %v873_v62 = vmul.f32 %v2355_v57, %v2355_v57 }
 0x281   : > { %833 = vadd.xlane.f32.xlu0 %v2343_v44  ;;  %v2369_v1 = vmax.f32 %v796_v63, 0.0  ;;  %v1043_v63 = vsub.s32 2, %v2271_v21 }
 0x282   : > { %v2367_v61 = vmax.f32 %v795_v60, 0.0 }
 0x283   : > { %835 = vadd.xlane.f32.xlu1 %v2345_v48  ;;  %v876_v28 = vmul.f32 %v2369_v1, %v2369_v1 }
 0x284   : > { %v875_v2 = vmul.f32 %v2367_v61, %v2367_v61 }
 0x285   : > { %897 = vadd.xlane.f32.xlu0 %v871_v51  ;;  %v1023_v51 = vsub.s32 1, %v2271_v21 }
 0x287   : > { %899 = vadd.xlane.f32.xlu1 %v872_v55 }
 0x289   : > { %837 = vadd.xlane.f32.xlu0 %v2355_v57 }
 0x28b   : > { %839 = vadd.xlane.f32.xlu1 %v2357_v59 }
 0x28d   : > { %901 = vadd.xlane.f32.xlu0 %v873_v62 }
 0x28f   : > { %903 = vadd.xlane.f32.xlu1 %v874_v0 }
 0x291   : > { %841 = vadd.xlane.f32.xlu0 %v2367_v61 }
 0x293   : > { %843 = vadd.xlane.f32.xlu1 %v2369_v1 }
 0x295   : > { %905 = vadd.xlane.f32.xlu0 %v875_v2 }
 0x297   : > { %907 = vadd.xlane.f32.xlu1 %v876_v28 }
 0x2e6   : > { %v816_v5 = vpop.xlane.xlu0 %815 }
 0x2e7   : > { %v846_v6 = vmul.f32 0.03125, %v816_v5 }
 0x2e8   : > { %v880_v7 = vpop.xlane.xlu1 %879 }
 0x2e9   : > { %v926_v8 = vmul.f32 %v846_v6, %v846_v6  ;;  %v910_v11 = vmul.f32 0.03125, %v880_v7  ;;  %v958_v7 = vsub.f32 %v2282_v39, %v846_v6 }
 0x2ea   : > { %v814_v12 = vpop.xlane.xlu0 %813 }
 0x2eb   : > { %v942_v13 = vsub.f32 %v910_v11, %v926_v8  ;;  %v845_v14 = vmul.f32 0.03125, %v814_v12  ;;  %v2387_v8 = vrot.slane %v2276_v25, %v1023_v51 }
 0x2ec   : > { %v820_v15 = vpop.xlane.xlu1 %819 }
 0x2ed   : > { %v974_v19 = vadd.f32 1e-05, %v942_v13  ;;  %v925_v32 = vmul.f32 %v845_v14, %v845_v14  ;;  %v2377_v37 = vmul.f32 0.03125, %v820_v15  ;;  %v2390_v15 = vrot.slane %v2276_v25, %v1043_v63 }
 0x2ee   : > { %v878_v31 = vpop.xlane.xlu0 %877 }
 0x2ef   : > { %1694 = vrsqrt.f32 %v974_v19  ;;  %v909_v34 = vmul.f32 0.03125, %v878_v31  ;;  %v928_v55 = vmul.f32 %v2377_v37, %v2377_v37 }
 0x2f0   : > { %v818_v35 = vpop.xlane.xlu1 %817 }
 0x2f1   : > { %v941_v40 = vsub.f32 %v909_v34, %v925_v32  ;;  %v847_v41 = vmul.f32 0.03125, %v818_v35 }
 0x2f2   : > { %v882_v42 = vpop.xlane.xlu0 %881 }
 0x2f3   : > { %v973_v43 = vadd.f32 1e-05, %v941_v40  ;;  %v927_v45 = vmul.f32 %v847_v41, %v847_v41  ;;  %v911_v50 = vmul.f32 0.03125, %v882_v42 }
 0x2f4   : > { %v884_v54 = vpop.xlane.xlu1 %883 }
 0x2f5   : > { %1696 = vrsqrt.f32 %v973_v43  ;;  %v943_v60 = vsub.f32 %v911_v50, %v927_v45  ;;  %v912_v62 = vmul.f32 0.03125, %v884_v54  ;;  %v957_v43 = vsub.f32 %v2289_v49, %v845_v14 }
 0x2f6   : > { %v822_v0 = vpop.xlane.xlu0 %821 }
 0x2f7   : > { %v975_v2 = vadd.f32 1e-05, %v943_v60  ;;  %v944_v28 = vsub.f32 %v912_v62, %v928_v55  ;;  %v2383_v5 = vmul.f32 0.03125, %v822_v0 }
 0x2f8   : > { %v824_v11 = vpop.xlane.xlu1 %823 }
 0x2f9   : > { %v1695_v12 = vpop.eup %1694  ;;  %1698 = vrsqrt.f32 %v975_v2  ;;  %v976_v13 = vadd.f32 1e-05, %v944_v28  ;;  %v2392_v31 = vmul.f32 0.03125, %v824_v11  ;;  %v929_v32 = vmul.f32 %v2383_v5, %v2383_v5 }
 0x2fa   : > { %v1006_v19 = vmul.f32 %v1695_v12, %v958_v7  ;;  %v886_v21 = vpop.xlane.xlu0 %885  ;;  %v959_v2 = vsub.f32 %v2295_v58, %v847_v41  ;;  %v960_v12 = vsub.f32 %v2292_v56, %v2377_v37 }
 0x2fb   : > { %1700 = vrsqrt.f32 %v976_v13  ;;  %v913_v34 = vmul.f32 0.03125, %v886_v21  ;;  %v930_v35 = vmul.f32 %v2392_v31, %v2392_v31 }
 0x2fc   : > { %v1026_v39 = vmul.f32 %v2387_v8, %v1006_v19  ;;  %v888_v6 = vpop.xlane.xlu1 %887 }
 0x2fd   : > { %v945_v40 = vsub.f32 %v913_v34, %v929_v32  ;;  %v914_v42 = vmul.f32 0.03125, %v888_v6 }
 0x2fe   : > { %v2400_v25 = vadd.f32 %v2390_v15, %v1026_v39  ;;  %v826_v45 = vpop.xlane.xlu0 %825 }
 0x2ff   : > { %v1697_v50 = vpop.eup %1696  ;;  %v977_v51 = vadd.f32 1e-05, %v945_v40  ;;  %v946_v54 = vsub.f32 %v914_v42, %v930_v35  ;;  %v2403_v55 = vmul.f32 0.03125, %v826_v45 }
 0x300   : > { %v1005_v60 = vmul.f32 %v1697_v50, %v957_v43  ;;  %v828_v62 = vpop.xlane.xlu1 %827  ;;  %1065 = vst [vmem:[#allocation10 + $0x8] sm:$0xff] (!%p2596_p3), %v2400_v25 }
 0x301   : > { %1702 = vrsqrt.f32 %v977_v51  ;;  %v978_v63 = vadd.f32 1e-05, %v946_v54  ;;  %v2407_v28 = vmul.f32 0.03125, %v828_v62  ;;  %v931_v49 = vmul.f32 %v2403_v55, %v2403_v55 }
 0x302   : > { %v1025_v0 = vmul.f32 %v2387_v8, %v1005_v60  ;;  %v890_v7 = vpop.xlane.xlu0 %889  ;;  %v961_v54 = vsub.f32 %v2307_v3, %v2383_v5 }
 0x303   : > { %v1699_v11 = vpop.eup %1698  ;;  %1704 = vrsqrt.f32 %v978_v63  ;;  %v915_v14 = vmul.f32 0.03125, %v890_v7  ;;  %v932_v58 = vmul.f32 %v2407_v28, %v2407_v28  ;;  %v962_v7 = vsub.f32 %v2309_v4, %v2392_v31 }
 0x304   : > { %v2414_v13 = vadd.f32 %v2390_v15, %v1025_v0  ;;  %v1007_v19 = vmul.f32 %v1699_v11, %v959_v2  ;;  %v892_v21 = vpop.xlane.xlu1 %891 }
 0x305   : > { %v1701_v32 = vpop.eup %1700  ;;  %v947_v41 = vsub.f32 %v915_v14, %v931_v49  ;;  %v916_v34 = vmul.f32 0.03125, %v892_v21 }
 0x306   : > { %v1027_v39 = vmul.f32 %v2387_v8, %v1007_v19  ;;  %v1008_v6 = vmul.f32 %v1701_v32, %v960_v12  ;;  %v830_v35 = vpop.xlane.xlu0 %829  ;;  %1064 = vst [vmem:[#allocation10] sm:$0xff] (!%p2596_p3), %v2414_v13 }
 0x307   : > { %v979_v40 = vadd.f32 1e-05, %v947_v41  ;;  %v948_v42 = vsub.f32 %v916_v34, %v932_v58  ;;  %v2419_v43 = vmul.f32 0.03125, %v830_v35 }
 0x308   : > { %v2422_v56 = vadd.f32 %v2390_v15, %v1027_v39  ;;  %v1028_v37 = vmul.f32 %v2387_v8, %v1008_v6  ;;  %v832_v45 = vpop.xlane.xlu1 %831 }
 0x309   : > { %1706 = vrsqrt.f32 %v979_v40  ;;  %v980_v50 = vadd.f32 1e-05, %v948_v42  ;;  %v2430_v60 = vmul.f32 0.03125, %v832_v45  ;;  %v933_v0 = vmul.f32 %v2419_v43, %v2419_v43 }
 0x30a   : > { %v2426_v51 = vadd.f32 %v2390_v15, %v1028_v37  ;;  %v894_v62 = vpop.xlane.xlu0 %893  ;;  %v963_v40 = vsub.f32 %v2319_v9, %v2403_v55  ;;  %1066 = vst [vmem:[#allocation10 + $0x10] sm:$0xff] (!%p2596_p3), %v2422_v56 }
 0x30b   : > { %v1703_v63 = vpop.eup %1702  ;;  %1708 = vrsqrt.f32 %v980_v50  ;;  %v917_v2 = vmul.f32 0.03125, %v894_v62  ;;  %v934_v12 = vmul.f32 %v2430_v60, %v2430_v60  ;;  %v964_v62 = vsub.f32 %v2321_v10, %v2407_v28 }
 0x30c   : > { %v1009_v11 = vmul.f32 %v1703_v63, %v961_v54  ;;  %v896_v49 = vpop.xlane.xlu1 %895  ;;  %1067 = vst [vmem:[#allocation10 + $0x18] sm:$0xff] (!%p2596_p3), %v2426_v51 }
 0x30d   : > { %v1705_v14 = vpop.eup %1704  ;;  %v949_v19 = vsub.f32 %v917_v2, %v933_v0  ;;  %v918_v3 = vmul.f32 0.03125, %v896_v49 }
 0x30e   : > { %v1029_v5 = vmul.f32 %v2387_v8, %v1009_v11  ;;  %v1010_v21 = vmul.f32 %v1705_v14, %v962_v7  ;;  %v834_v32 = vpop.xlane.xlu0 %833 }
 0x30f   : > { %v981_v58 = vadd.f32 1e-05, %v949_v19  ;;  %v950_v41 = vsub.f32 %v918_v3, %v934_v12  ;;  %v2439_v34 = vmul.f32 0.03125, %v834_v32 }
 0x310   : > { %v2442_v39 = vadd.f32 %v2390_v15, %v1029_v5  ;;  %v1030_v4 = vmul.f32 %v2387_v8, %v1010_v21  ;;  %v836_v31 = vpop.xlane.xlu1 %835 }
 0x311   : > { %1710 = vrsqrt.f32 %v981_v58  ;;  %v982_v6 = vadd.f32 1e-05, %v950_v41  ;;  %v2450_v42 = vmul.f32 0.03125, %v836_v31  ;;  %v935_v50 = vmul.f32 %v2439_v34, %v2439_v34 }
 0x312   : > { %v2446_v35 = vadd.f32 %v2390_v15, %v1030_v4  ;;  %v898_v37 = vpop.xlane.xlu0 %897  ;;  %v965_v58 = vsub.f32 %v2331_v24, %v2419_v43  ;;  %1068 = vst [vmem:[#allocation10 + $0x20] sm:$0xff] (!%p2596_p3), %v2442_v39 }
 0x313   : > { %v1707_v45 = vpop.eup %1706  ;;  %1712 = vrsqrt.f32 %v982_v6  ;;  %v919_v54 = vmul.f32 0.03125, %v898_v37  ;;  %v936_v7 = vmul.f32 %v2450_v42, %v2450_v42  ;;  %v966_v37 = vsub.f32 %v2333_v33, %v2430_v60 }
 0x314   : > { %v1011_v63 = vmul.f32 %v1707_v45, %v963_v40  ;;  %v900_v0 = vpop.xlane.xlu1 %899  ;;  %1069 = vst [vmem:[#allocation10 + $0x28] sm:$0xff] (!%p2596_p3), %v2446_v35 }
 0x315   : > { %v1709_v2 = vpop.eup %1708  ;;  %v951_v11 = vsub.f32 %v919_v54, %v935_v50  ;;  %v920_v9 = vmul.f32 0.03125, %v900_v0 }
 0x316   : > { %v1031_v55 = vmul.f32 %v2387_v8, %v1011_v63  ;;  %v1012_v49 = vmul.f32 %v1709_v2, %v964_v62  ;;  %v838_v14 = vpop.xlane.xlu0 %837 }
 0x317   : > { %v983_v12 = vadd.f32 1e-05, %v951_v11  ;;  %v952_v19 = vsub.f32 %v920_v9, %v936_v7  ;;  %v857_v3 = vmul.f32 0.03125, %v838_v14 }
 0x318   : > { %v2460_v5 = vadd.f32 %v2390_v15, %v1031_v55  ;;  %v1032_v10 = vmul.f32 %v2387_v8, %v1012_v49  ;;  %v840_v28 = vpop.xlane.xlu1 %839 }
 0x319   : > { %1714 = vrsqrt.f32 %v983_v12  ;;  %v984_v21 = vadd.f32 1e-05, %v952_v19  ;;  %v858_v41 = vmul.f32 0.03125, %v840_v28  ;;  %v937_v6 = vmul.f32 %v857_v3, %v857_v3 }
 0x31a   : > { %v2464_v32 = vadd.f32 %v2390_v15, %v1032_v10  ;;  %v902_v4 = vpop.xlane.xlu0 %901  ;;  %v967_v12 = vsub.f32 %v2343_v44, %v2439_v34  ;;  %1070 = vst [vmem:[#allocation10 + $0x30] sm:$0xff] (!%p2596_p3), %v2460_v5 }
 0x31b   : > { %v1711_v31 = vpop.eup %1710  ;;  %1716 = vrsqrt.f32 %v984_v21  ;;  %v921_v40 = vmul.f32 0.03125, %v902_v4  ;;  %v938_v62 = vmul.f32 %v858_v41, %v858_v41  ;;  %v968_v4 = vsub.f32 %v2345_v48, %v2450_v42 }
 0x31c   : > { %v1013_v45 = vmul.f32 %v1711_v31, %v965_v58  ;;  %v904_v50 = vpop.xlane.xlu1 %903  ;;  %v969_v48 = vsub.f32 %v2355_v57, %v857_v3  ;;  %1071 = vst [vmem:[#allocation10 + $0x38] sm:$0xff] (!%p2596_p3), %v2464_v32 }
 0x31d   : > { %v1713_v54 = vpop.eup %1712  ;;  %v953_v63 = vsub.f32 %v921_v40, %v937_v6  ;;  %v922_v0 = vmul.f32 0.03125, %v904_v50 }
 0x31e   : > { %v1033_v2 = vmul.f32 %v2387_v8, %v1013_v45  ;;  %v1014_v7 = vmul.f32 %v1713_v54, %v966_v37  ;;  %v842_v11 = vpop.xlane.xlu0 %841 }
 0x31f   : > { %v985_v24 = vadd.f32 1e-05, %v953_v63  ;;  %v954_v43 = vsub.f32 %v922_v0, %v938_v62  ;;  %v859_v9 = vmul.f32 0.03125, %v842_v11  ;;  %v970_v11 = vsub.f32 %v2357_v59, %v858_v41 }
 0x320   : > { %v2472_v55 = vadd.f32 %v2390_v15, %v1033_v2  ;;  %v1034_v49 = vmul.f32 %v2387_v8, %v1014_v7  ;;  %v844_v14 = vpop.xlane.xlu1 %843 }
 0x321   : > { %1718 = vrsqrt.f32 %v985_v24  ;;  %v986_v33 = vadd.f32 1e-05, %v954_v43  ;;  %v860_v19 = vmul.f32 0.03125, %v844_v14  ;;  %v939_v21 = vmul.f32 %v859_v9, %v859_v9 }
 0x322   : > { %v2476_v60 = vadd.f32 %v2390_v15, %v1034_v49  ;;  %v906_v10 = vpop.xlane.xlu0 %905  ;;  %1072 = vst [vmem:[#allocation10 + $0x40] sm:$0xff] (!%p2596_p3), %v2472_v55 }
 0x323   : > { %v1715_v28 = vpop.eup %1714  ;;  %1720 = vrsqrt.f32 %v986_v33  ;;  %v923_v58 = vmul.f32 0.03125, %v906_v10  ;;  %v940_v37 = vmul.f32 %v860_v19, %v860_v19  ;;  %v972_v57 = vsub.f32 %v2369_v1, %v860_v19 }
 0x324   : > { %v1015_v31 = vmul.f32 %v1715_v28, %v967_v12  ;;  %v908_v6 = vpop.xlane.xlu1 %907  ;;  %v971_v28 = vsub.f32 %v2367_v61, %v859_v9  ;;  %1073 = vst [vmem:[#allocation10 + $0x48] sm:$0xff] (!%p2596_p3), %v2476_v60 }
 0x325   : > { %v1717_v40 = vpop.eup %1716  ;;  %v955_v45 = vsub.f32 %v923_v58, %v939_v21  ;;  %v924_v50 = vmul.f32 0.03125, %v908_v6 }
 0x326   : > { %v1035_v54 = vmul.f32 %v2387_v8, %v1015_v31  ;;  %v1016_v62 = vmul.f32 %v1717_v40, %v968_v4 }
 0x327   : > { %v987_v63 = vadd.f32 1e-05, %v955_v45  ;;  %v956_v44 = vsub.f32 %v924_v50, %v940_v37 }
 0x328   : > { %v1055_v34 = vadd.f32 %v2390_v15, %v1035_v54  ;;  %v1036_v0 = vmul.f32 %v2387_v8, %v1016_v62 }
 0x329   : > { %1722 = vrsqrt.f32 %v987_v63  ;;  %v988_v2 = vadd.f32 1e-05, %v956_v44 }
 0x32a   : > { %v1056_v7 = vadd.f32 %v2390_v15, %v1036_v0  ;;  %1074 = vst [vmem:[#allocation10 + $0x50] sm:$0xff] (!%p2596_p3), %v1055_v34 }
 0x32b   : > { %v1719_v42 = vpop.eup %1718  ;;  %1724 = vrsqrt.f32 %v988_v2 }
 0x32c   : > { %v1017_v24 = vmul.f32 %v1719_v42, %v969_v48  ;;  %1075 = vst [vmem:[#allocation10 + $0x58] sm:$0xff] (!%p2596_p3), %v1056_v7 }
 0x32d   : > { %v1721_v43 = vpop.eup %1720 }
 0x32e   : > { %v1037_v49 = vmul.f32 %v2387_v8, %v1017_v24  ;;  %v1018_v14 = vmul.f32 %v1721_v43, %v970_v11 }
 0x330   : > { %v1057_v33 = vadd.f32 %v2390_v15, %v1037_v49  ;;  %v1038_v12 = vmul.f32 %v2387_v8, %v1018_v14 }
 0x332   : > { %v1058_v10 = vadd.f32 %v2390_v15, %v1038_v12  ;;  %1076 = vst [vmem:[#allocation10 + $0x60] sm:$0xff] (!%p2596_p3), %v1057_v33 }
 0x333   : > { %v1723_v21 = vpop.eup %1722 }
 0x334   : > { %v1019_v3 = vmul.f32 %v1723_v21, %v971_v28  ;;  %1063 = sbr.rel (%p2596_p3) target bundleno = 829 (0x33d), region = 56  ;;  %1077 = vst [vmem:[#allocation10 + $0x68] sm:$0xff] (!%p2596_p3), %v1058_v10 }
 0x335   : > { %v1725_v58 = vpop.eup %1724 }
 0x336   : > { %v1039_v59 = vmul.f32 %v2387_v8, %v1019_v3  ;;  %v1020_v41 = vmul.f32 %v1725_v58, %v972_v57 }
 0x338   : > { %v1059_v4 = vadd.f32 %v2390_v15, %v1039_v59  ;;  %v1040_v31 = vmul.f32 %v2387_v8, %v1020_v41 }
 0x33a   : > { %v1060_v6 = vadd.f32 %v2390_v15, %v1040_v31  ;;  %1078 = vst [vmem:[#allocation10 + $0x70] sm:$0xff] (!%p2596_p3), %v1059_v4 }
 0x33c   : > { %1079 = vst [vmem:[#allocation10 + $0x78] sm:$0xff] %v1060_v6 }
 0x33d PF: > { %p1228_p5 = scmp.le.s32.totalorder %s2023_s27, 0 }
 0x33e   : > { %v1084_v61 = vadd.f32 (!%p1228_p5), %v2414_v13, %v2133_v16  ;;  %v1085_v1 = vadd.f32 (!%p1228_p5), %v2400_v25, %v2135_v17  ;;  %v1086_v8 = vadd.f32 (!%p1228_p5), %v2422_v56, %v2137_v18  ;;  %v1087_v15 = vadd.f32 (!%p1228_p5), %v2426_v51, %v2141_v20 }
 0x33f   : > { %1083 = sbr.rel (%p1228_p5) target bundleno = 840 (0x348), region = 60  ;;  %v1088_v9 = vadd.f32 (!%p1228_p5), %v2442_v39, %v2145_v22  ;;  %v1089_v19 = vadd.f32 (!%p1228_p5), %v2446_v35, %v2147_v23  ;;  %v1090_v40 = vadd.f32 (!%p1228_p5), %v2460_v5, %v2151_v26  ;;  %v1091_v16 = vadd.f32 (!%p1228_p5), %v2464_v32, %v2153_v27 }
 0x340   : > { %1100 = vst [vmem:[#allocation10] sm:$0xff] (!%p1228_p5), %v1084_v61  ;;  %1101 = vst [vmem:[#allocation10 + $0x8] sm:$0xff] (!%p1228_p5), %v1085_v1  ;;  %v1092_v17 = vadd.f32 (!%p1228_p5), %v2472_v55, %v2157_v29  ;;  %v1093_v18 = vadd.f32 (!%p1228_p5), %v2476_v60, %v2159_v30  ;;  %v1094_v20 = vadd.f32 (!%p1228_p5), %v1055_v34, %v2166_v36 }
 0x341   : > { %1102 = vst [vmem:[#allocation10 + $0x10] sm:$0xff] (!%p1228_p5), %v1086_v8  ;;  %1103 = vst [vmem:[#allocation10 + $0x18] sm:$0xff] (!%p1228_p5), %v1087_v15  ;;  %v1095_v22 = vadd.f32 (!%p1228_p5), %v1056_v7, %v2169_v38  ;;  %v1096_v23 = vadd.f32 (!%p1228_p5), %v1057_v33, %v2177_v46  ;;  %v1097_v26 = vadd.f32 (!%p1228_p5), %v1058_v10, %v2179_v47 }
 0x342   : > { %1104 = vst [vmem:[#allocation10 + $0x20] sm:$0xff] (!%p1228_p5), %v1088_v9  ;;  %1105 = vst [vmem:[#allocation10 + $0x28] sm:$0xff] (!%p1228_p5), %v1089_v19  ;;  %v1098_v27 = vadd.f32 (!%p1228_p5), %v1059_v4, %v2185_v52  ;;  %v1099_v25 = vadd.f32 (!%p1228_p5), %v1060_v6, %v2187_v53 }
 0x343   : > { %1106 = vst [vmem:[#allocation10 + $0x30] sm:$0xff] (!%p1228_p5), %v1090_v40  ;;  %1107 = vst [vmem:[#allocation10 + $0x38] sm:$0xff] (!%p1228_p5), %v1091_v16 }
 0x344   : > { %1108 = vst [vmem:[#allocation10 + $0x40] sm:$0xff] (!%p1228_p5), %v1092_v17  ;;  %1109 = vst [vmem:[#allocation10 + $0x48] sm:$0xff] (!%p1228_p5), %v1093_v18 }
 0x345   : > { %1110 = vst [vmem:[#allocation10 + $0x50] sm:$0xff] (!%p1228_p5), %v1094_v20  ;;  %1111 = vst [vmem:[#allocation10 + $0x58] sm:$0xff] (!%p1228_p5), %v1095_v22 }
 0x346   : > { %1112 = vst [vmem:[#allocation10 + $0x60] sm:$0xff] %v1096_v23  ;;  %1113 = vst [vmem:[#allocation10 + $0x68] sm:$0xff] %v1097_v26 }
 0x347   : > { %1114 = vst [vmem:[#allocation10 + $0x70] sm:$0xff] %v1098_v27  ;;  %1115 = vst [vmem:[#allocation10 + $0x78] sm:$0xff] %v1099_v25 }
 0x348 PF: > { %p1653_p10 = scmp.eq.s32.totalorder %s2023_s27, 2  ;;  %s1914_s5 = smov [#allocation10]  }
 0x349   : > { %s1122_s23 = sshll.u32 %s1914_s5, 4  ;;  %s1123_s23 = int_to_ptr.vmem [resolvable:$true] %s1122_s23 }
 0x34a   : > { %s1836_s29 = scalar_lea.vmem %s1123_s23, 2048  ;;  %p1843_p13 = scmp.lt.s32.totalorder %s1123_s23, %s1123_s23 }
 0x34b   : > { %p1837_p11 = scmp.ne.s32.totalorder %s1123_s23, %s1836_s29  ;;  %p1844_p6 = scmp.lt.s32.totalorder %s1836_s29, %s1836_s29 }
 0x34d   : > { %p1838_p9 = pnand %p1837_p11, %p1653_p10  ;;  %p1845_p0 = por %p1844_p6, %p1843_p13 }
 0x34f   : > { %p1839_p8 = pneg %p1838_p9 }
 0x351   : > { %p1846_p4 = pnand %p1845_p0, %p1839_p8 }
 0x353   : > { %1849 = shalt.err (!%p1846_p4)
}
 0x354   : > { %s1850_s6 = scalar_lea.hbm %s2577_s4, 2048 }
 0x355   : > { %p1851_p1 = scmp.ne.s32.totalorder %s2577_s4, %s1850_s6  ;;  %p1856_p2 = scmp.lt.u32.totalorder %s1850_s6, %s2577_s4 }
 0x357   : > { %p1852_p7 = pnand %p1851_p1, %p1653_p10 }
 0x359   : > { %p1853_p12 = pneg %p1852_p7 }
 0x35b   : > { %p1858_p3 = pnand %p1856_p2, %p1853_p12 }
 0x35d   : > { %1861 = shalt.err (!%p1858_p3)
}
 0x35e   : > { %s1915_s14 = smov 128   ;;  %s1916_s28 = smov 8  }
 0x35f   : > { %1636 = dma.vmem_to_hbm [thread:$0]  (%p1653_p10), %s1123_s23, 2048, %s2577_s4, [#allocation6], %s1915_s14, %s1915_s14, %s1916_s28  }
 0x360   : > { %1889 = dma.done.wait (%p1653_p10), [#allocation6], 2048  }
 0x361   : > { %1891 = vsyncadd (%p1653_p10), [#allocation6], 4294965248 }
 0x362 PF: > { %p16_p5 = scmp.ge.s32.totalorder %s1963_s19, 5   ;;  %s2597_s15 = smov %s1898_s16 }
 0x363   : > { %s2598_s16 = smov %s1902_s17  ;;  %s2599_s17 = smov %s1972_s22 }
 0x364   : > { %s2600_s18 = smov %s1963_s19  ;;  %18 = sbr.rel (!%p16_p5) target bundleno = 5 (0x5), region = 101 }
 0x36b   :  { %1138 = vsyncpa [#allocation5], 1 }
 0x36c   :  { %1140 = vsyncpa [#allocation5 + $0x1], 1 }
 0x36d   :  { %1141 = vsyncpa [#allocation8], 1 }
 0x36e   :  { %1143 = vsyncpa [#allocation8 + $0x1], 1 }
 0x36f   :  { %1144 = vsyncpa [#allocation6], 1 }
 0x370   :  { %1146 = vsyncpa [#allocation6 + $0x1], 1 }
 0x371   :  { %1147 = vsyncmov [#allocation3] }
 0x374   :  { %s1148_s27 = vpop.sfrf %1147 }
 0x375   :  { %p1233_p10 = scmp.ne.s32.totalorder %s1148_s27, 0 }
 0x377   :  { %1152 = shalt.err (%p1233_p10)  }

</bundles_post_ra>
